<compile_context>
chip_gen: v7x
topology: tpu7x:2x2x1
jax: 0.10.0
libtpu: 0.0.40
codegen_flags: <defaults>
</compile_context>

<pallas_src>
import functools

import jax
import jax.numpy as jnp
from jax.experimental import pallas as pl
from jax.experimental.pallas import tpu as pltpu


def _round_up(x, m):
    return (x + m - 1) // m * m


def noise_mlp_kernel(x_ref, w1_ref, b1_ref, w2_ref, b2_ref, o_ref):
    # x arrives f32 (single HBM read); the bf16 cast rides on the VPU next to
    # the MXU work.
    x = x_ref[...].astype(jnp.bfloat16)
    # First linear: (TB, IN)bf16 @ (IN, Hp)bf16 -> f32 accumulator on the MXU.
    h = jnp.dot(x, w1_ref[...], preferred_element_type=jnp.float32)
    h = h + b1_ref[...]                          # f32 bias add (VPU)
    h = jnp.minimum(jnp.maximum(h, 0.0), 6.0)    # ReLU6 in f32
    # Second linear: cast activation to bf16 for the MXU, accumulate in f32.
    y = jnp.dot(h.astype(jnp.bfloat16), w2_ref[...],
                preferred_element_type=jnp.float32)
    y = y + b2_ref[...]
    # Numerically-stable sigmoid with the divide on the EUP (approx vrcp):
    #   z = exp(-|y|); r = 1/(1+z); sigmoid(y) = r (y>=0) else z*r.
    z = jnp.exp(-jnp.abs(y))                     # EUP
    r = pl.reciprocal(1.0 + z, approx=True)      # EUP
    o_ref[...] = jnp.where(y >= 0.0, r, z * r).astype(o_ref.dtype)


def prepare_noise_params(w1, b1, w2, b2):
    """Pad hidden 1000 -> 1024 and cast to bf16 ONCE (outside the hot path)."""
    hid = w1.shape[1]
    hid_pad = _round_up(hid, 128)
    w1p = jnp.pad(w1, ((0, 0), (0, hid_pad - hid))).astype(jnp.bfloat16)
    b1p = jnp.pad(b1, (0, hid_pad - hid)).reshape(1, hid_pad).astype(jnp.float32)
    w2p = jnp.pad(w2, ((0, hid_pad - hid), (0, 0))).astype(jnp.bfloat16)
    b2p = b2.reshape(1, -1).astype(jnp.float32)
    return w1p, b1p, w2p, b2p


@functools.partial(
    jax.jit,
    static_argnames=("tile_b", "out_dtype", "single_buffer_weights"))
def noise_forward(x, w1p, b1p, w2p, b2p, *, tile_b=1024,
                  out_dtype=jnp.float32, single_buffer_weights=True):
    """x: (B, input_number) f32. w1p/b1p/w2p/b2p: prepare_noise_params output.
    Returns sigmoid(relu6(x @ w1 + b1) @ w2 + b2) with dtype `out_dtype`."""
    B, IN = x.shape
    hid_pad = w1p.shape[1]
    OUT = w2p.shape[1]

    # Batch tiling: multiples of 16 rows (bf16 sublane tile) so loads/stores
    # stay unmasked. Keep >= 2 grid steps when the batch allows it so the
    # "parallel" axis can split across v7x's two TensorCores.
    b16 = _round_up(B, 16)
    tile_b = min(tile_b, b16)
    if b16 > 16 and b16 <= tile_b:
        tile_b = _round_up(b16 // 2, 16)
    b_pad = _round_up(B, tile_b)

    xb = x.astype(jnp.float32)
    if b_pad != B:
        # Padded rows compute bias-only garbage and are sliced off at the end.
        xb = jnp.pad(xb, ((0, b_pad - B), (0, 0)))
    grid = (b_pad // tile_b,)

    def resident_spec(shape):
        # Grid-invariant blocks: default double-buffering only doubles their
        # VMEM residency, so request a single buffer when supported.
        if single_buffer_weights:
            return pl.BlockSpec(shape, lambda i: (0, 0),
                                pipeline_mode=pl.Buffered(1))
        return pl.BlockSpec(shape, lambda i: (0, 0))

    out = pl.pallas_call(
        noise_mlp_kernel,
        out_shape=jax.ShapeDtypeStruct((b_pad, OUT), out_dtype),
        grid_spec=pltpu.PrefetchScalarGridSpec(
            num_scalar_prefetch=0,
            grid=grid,
            in_specs=[
                pl.BlockSpec((tile_b, IN), lambda i: (i, 0)),  # x (pipelined)
                resident_spec((IN, hid_pad)),                  # w1 (resident)
                resident_spec((1, hid_pad)),                   # b1 (resident)
                resident_spec((hid_pad, OUT)),                 # w2 (resident)
                resident_spec((1, OUT)),                       # b2 (resident)
            ],
            out_specs=pl.BlockSpec((tile_b, OUT), lambda i: (i, 0)),
        ),
        compiler_params=pltpu.CompilerParams(
            # Batch is embarrassingly parallel -> shard across the two
            # TensorCores on v7x; no-op on v5e/v6e.
            dimension_semantics=("parallel",),
        ),
    )(xb, w1p, b1p, w2p, b2p)

    return out[:B]


def init_params(key, input_number, hidden, out_dim):
    """Deterministic init mirroring PyTorch nn.Linear default
    (U(-1/sqrt(fan_in), 1/sqrt(fan_in)))."""
    k1, k2, k3, k4 = jax.random.split(key, 4)
    lim1 = 1.0 / jnp.sqrt(jnp.float32(input_number))
    lim2 = 1.0 / jnp.sqrt(jnp.float32(hidden))
    w1 = jax.random.uniform(k1, (input_number, hidden), jnp.float32, -lim1, lim1)
    b1 = jax.random.uniform(k2, (hidden,), jnp.float32, -lim1, lim1)
    w2 = jax.random.uniform(k3, (hidden, out_dim), jnp.float32, -lim2, lim2)
    b2 = jax.random.uniform(k4, (out_dim,), jnp.float32, -lim2, lim2)
    return w1, b1, w2, b2


if __name__ == "__main__":
    # Small shapes consistent with the module:
    #   input_number = 32, m_n = n_n = 16 -> output dim 256, hidden = 1000
    batch = 2
    input_number = 32
    m_n, n_n = 16, 16
    hidden = 1000

    key = jax.random.PRNGKey(0)
    kx, kp = jax.random.split(key)
    x = jax.random.normal(kx, (batch, input_number), jnp.float32)
    w1, b1, w2, b2 = init_params(kp, input_number, hidden, m_n * n_n)

    params = prepare_noise_params(w1, b1, w2, b2)

    try:
        out = jax.block_until_ready(noise_forward(x, *params))
    except Exception:
        # Fallback if this jax build rejects pipeline_mode on pallas_call
        # BlockSpecs: default double-buffering of the ~0.6 MiB weights is
        # harmless at these shapes.
        out = jax.block_until_ready(
            noise_forward(x, *params, single_buffer_weights=False))

    # Pure-JAX f32 reference of the PyTorch module semantics.
    h_ref = jnp.minimum(jnp.maximum(x @ w1 + b1, 0.0), 6.0)
    y_ref = jax.nn.sigmoid(h_ref @ w2 + b2)
    assert out.shape == (batch, m_n * n_n)
    # bf16 MXU operands (f32 accumulation) + approx-reciprocal sigmoid ->
    # loosened tolerance vs the pure-f32 reference.
    max_err = float(jnp.max(jnp.abs(out.astype(jnp.float32) - y_ref)))
    assert jnp.allclose(out.astype(jnp.float32), y_ref, atol=2e-2, rtol=0.0), max_err

    print("KERNEL_OK")
</pallas_src>

<mosaic_0001>
module attributes {stable_mosaic.version = 11 : i64} {
  func.func @noise_mlp_kernel(%arg0: i32, %arg1: memref<16x32xf32, #tpu.memory_space<vmem>>, %arg2: memref<32x1024xbf16, #tpu.memory_space<vmem>>, %arg3: memref<1x1024xf32, #tpu.memory_space<vmem>>, %arg4: memref<1024x256xbf16, #tpu.memory_space<vmem>>, %arg5: memref<1x256xf32, #tpu.memory_space<vmem>>, %arg6: memref<16x256xf32, #tpu.memory_space<vmem>>) attributes {dimension_semantics = [#tpu.dimension_semantics<parallel>], iteration_bounds = array<i64: 1>, scalar_prefetch = 0 : i64, scratch_operands = 0 : i64, tpu.core_type = #tpu.core_type<tc>, window_params = [{transform_indices = @transform_0, window_bounds = array<i64: 16, 32>}, {pipeline_mode = #tpu.pipeline_mode<synchronous>, transform_indices = @transform_1, window_bounds = array<i64: 32, 1024>}, {pipeline_mode = #tpu.pipeline_mode<synchronous>, transform_indices = @transform_2, window_bounds = array<i64: 1, 1024>}, {pipeline_mode = #tpu.pipeline_mode<synchronous>, transform_indices = @transform_3, window_bounds = array<i64: 1024, 256>}, {pipeline_mode = #tpu.pipeline_mode<synchronous>, transform_indices = @transform_4, window_bounds = array<i64: 1, 256>}, {transform_indices = @transform_5, window_bounds = array<i64: 16, 256>}]} {
    %c0 = arith.constant 0 : index
    %c0_0 = arith.constant 0 : index
    %0 = vector.load %arg1[%c0, %c0_0] : memref<16x32xf32, #tpu.memory_space<vmem>>, vector<16x32xf32>
    %1 = arith.truncf %0 : vector<16x32xf32> to vector<16x32xbf16>
    %c0_1 = arith.constant 0 : index
    %c0_2 = arith.constant 0 : index
    %2 = vector.load %arg2[%c0_1, %c0_2] : memref<32x1024xbf16, #tpu.memory_space<vmem>>, vector<32x1024xbf16>
    %cst = arith.constant dense<0.000000e+00> : vector<16x1024xf32>
    %3 = tpu.matmul %1, %2, %cst {dimension_numbers = #tpu.dot_dimension_numbers<[1], [0], [0], [1], [0, 0, 1, 1], [], []>} : vector<16x32xbf16>, vector<32x1024xbf16>, vector<16x1024xf32> -> vector<16x1024xf32>
    %c0_3 = arith.constant 0 : index
    %c0_4 = arith.constant 0 : index
    %4 = vector.load %arg3[%c0_3, %c0_4] : memref<1x1024xf32, #tpu.memory_space<vmem>>, vector<1x1024xf32>
    %5 = vector.broadcast %4 : vector<1x1024xf32> to vector<16x1024xf32>
    %6 = arith.addf %3, %5 : vector<16x1024xf32>
    %cst_5 = arith.constant 0.000000e+00 : f32
    %7 = vector.broadcast %cst_5 : f32 to vector<16x1024xf32>
    %8 = arith.maximumf %6, %7 : vector<16x1024xf32>
    %cst_6 = arith.constant 6.000000e+00 : f32
    %9 = vector.broadcast %cst_6 : f32 to vector<16x1024xf32>
    %10 = arith.minimumf %8, %9 : vector<16x1024xf32>
    %11 = arith.truncf %10 : vector<16x1024xf32> to vector<16x1024xbf16>
    %c0_7 = arith.constant 0 : index
    %c0_8 = arith.constant 0 : index
    %12 = vector.load %arg4[%c0_7, %c0_8] : memref<1024x256xbf16, #tpu.memory_space<vmem>>, vector<1024x256xbf16>
    %cst_9 = arith.constant dense<0.000000e+00> : vector<16x256xf32>
    %13 = tpu.matmul %11, %12, %cst_9 {dimension_numbers = #tpu.dot_dimension_numbers<[1], [0], [0], [1], [0, 0, 1, 1], [], []>} : vector<16x1024xbf16>, vector<1024x256xbf16>, vector<16x256xf32> -> vector<16x256xf32>
    %c0_10 = arith.constant 0 : index
    %c0_11 = arith.constant 0 : index
    %14 = vector.load %arg5[%c0_10, %c0_11] : memref<1x256xf32, #tpu.memory_space<vmem>>, vector<1x256xf32>
    %15 = vector.broadcast %14 : vector<1x256xf32> to vector<16x256xf32>
    %16 = arith.addf %13, %15 : vector<16x256xf32>
    %17 = math.absf %16 : vector<16x256xf32>
    %cst_12 = arith.constant 0.000000e+00 : f32
    %18 = vector.broadcast %cst_12 : f32 to vector<16x256xf32>
    %19 = arith.subf %18, %17 : vector<16x256xf32>
    %20 = math.exp %19 : vector<16x256xf32>
    %cst_13 = arith.constant 1.000000e+00 : f32
    %21 = vector.broadcast %cst_13 : f32 to vector<16x256xf32>
    %22 = arith.addf %21, %20 : vector<16x256xf32>
    %23 = tpu.reciprocal %22 {approx = true} : vector<16x256xf32> -> vector<16x256xf32>
    %cst_14 = arith.constant 0.000000e+00 : f32
    %24 = vector.broadcast %cst_14 : f32 to vector<16x256xf32>
    %25 = arith.cmpf oge, %16, %24 : vector<16x256xf32>
    %26 = arith.mulf %20, %23 : vector<16x256xf32>
    %27 = arith.select %25, %23, %26 : vector<16x256xi1>, vector<16x256xf32>
    %c0_15 = arith.constant 0 : index
    %c0_16 = arith.constant 0 : index
    %28 = vector.load %arg6[%c0_15, %c0_16] : memref<16x256xf32, #tpu.memory_space<vmem>>, vector<16x256xf32>
    tpu.vector_store %arg6[%c0_15, %c0_16], %27 {strides = array<i32>} : memref<16x256xf32, #tpu.memory_space<vmem>>, vector<16x256xf32>,
    return
  }
  func.func @transform_0(%arg0: i32) -> (i32, i32) {
    %c0_i32 = arith.constant 0 : i32
    %c0_i32_0 = arith.constant 0 : i32
    return %arg0, %c0_i32 : i32, i32
  }
  func.func @transform_1(%arg0: i32) -> (i32, i32) {
    %c0_i32 = arith.constant 0 : i32
    %c0_i32_0 = arith.constant 0 : i32
    %c0_i32_1 = arith.constant 0 : i32
    return %c0_i32, %c0_i32_0 : i32, i32
  }
  func.func @transform_2(%arg0: i32) -> (i32, i32) {
    %c0_i32 = arith.constant 0 : i32
    %c0_i32_0 = arith.constant 0 : i32
    %c0_i32_1 = arith.constant 0 : i32
    return %c0_i32, %c0_i32_0 : i32, i32
  }
  func.func @transform_3(%arg0: i32) -> (i32, i32) {
    %c0_i32 = arith.constant 0 : i32
    %c0_i32_0 = arith.constant 0 : i32
    %c0_i32_1 = arith.constant 0 : i32
    return %c0_i32, %c0_i32_0 : i32, i32
  }
  func.func @transform_4(%arg0: i32) -> (i32, i32) {
    %c0_i32 = arith.constant 0 : i32
    %c0_i32_0 = arith.constant 0 : i32
    %c0_i32_1 = arith.constant 0 : i32
    return %c0_i32, %c0_i32_0 : i32, i32
  }
  func.func @transform_5(%arg0: i32) -> (i32, i32) {
    %c0_i32 = arith.constant 0 : i32
    %c0_i32_0 = arith.constant 0 : i32
    return %arg0, %c0_i32 : i32, i32
  }
}

module attributes {stable_mosaic.version = 11 : i64} {
  func.func @noise_mlp_kernel(%arg0: i32, %arg1: memref<16x32xf32, #tpu.memory_space<vmem>>, %arg2: memref<32x1024xbf16, #tpu.memory_space<vmem>>, %arg3: memref<1x1024xf32, #tpu.memory_space<vmem>>, %arg4: memref<1024x256xbf16, #tpu.memory_space<vmem>>, %arg5: memref<1x256xf32, #tpu.memory_space<vmem>>, %arg6: memref<16x256xf32, #tpu.memory_space<vmem>>) attributes {dimension_semantics = [#tpu.dimension_semantics<parallel>], iteration_bounds = array<i64: 1>, scalar_prefetch = 0 : i64, scratch_operands = 0 : i64, tpu.core_type = #tpu.core_type<tc>, window_params = [{transform_indices = @transform_0, window_bounds = array<i64: 16, 32>}, {pipeline_mode = #tpu.pipeline_mode<synchronous>, transform_indices = @transform_1, window_bounds = array<i64: 32, 1024>}, {pipeline_mode = #tpu.pipeline_mode<synchronous>, transform_indices = @transform_2, window_bounds = array<i64: 1, 1024>}, {pipeline_mode = #tpu.pipeline_mode<synchronous>, transform_indices = @transform_3, window_bounds = array<i64: 1024, 256>}, {pipeline_mode = #tpu.pipeline_mode<synchronous>, transform_indices = @transform_4, window_bounds = array<i64: 1, 256>}, {transform_indices = @transform_5, window_bounds = array<i64: 16, 256>}]} {
    %c0 = arith.constant 0 : index
    %c0_0 = arith.constant 0 : index
    %0 = vector.load %arg1[%c0, %c0_0] : memref<16x32xf32, #tpu.memory_space<vmem>>, vector<16x32xf32>
    %1 = arith.truncf %0 : vector<16x32xf32> to vector<16x32xbf16>
    %c0_1 = arith.constant 0 : index
    %c0_2 = arith.constant 0 : index
    %2 = vector.load %arg2[%c0_1, %c0_2] : memref<32x1024xbf16, #tpu.memory_space<vmem>>, vector<32x1024xbf16>
    %cst = arith.constant dense<0.000000e+00> : vector<16x1024xf32>
    %3 = tpu.matmul %1, %2, %cst {dimension_numbers = #tpu.dot_dimension_numbers<[1], [0], [0], [1], [0, 0, 1, 1], [], []>} : vector<16x32xbf16>, vector<32x1024xbf16>, vector<16x1024xf32> -> vector<16x1024xf32>
    %c0_3 = arith.constant 0 : index
    %c0_4 = arith.constant 0 : index
    %4 = vector.load %arg3[%c0_3, %c0_4] : memref<1x1024xf32, #tpu.memory_space<vmem>>, vector<1x1024xf32>
    %5 = vector.broadcast %4 : vector<1x1024xf32> to vector<16x1024xf32>
    %6 = arith.addf %3, %5 : vector<16x1024xf32>
    %cst_5 = arith.constant 0.000000e+00 : f32
    %7 = vector.broadcast %cst_5 : f32 to vector<16x1024xf32>
    %8 = arith.maximumf %6, %7 : vector<16x1024xf32>
    %cst_6 = arith.constant 6.000000e+00 : f32
    %9 = vector.broadcast %cst_6 : f32 to vector<16x1024xf32>
    %10 = arith.minimumf %8, %9 : vector<16x1024xf32>
    %11 = arith.truncf %10 : vector<16x1024xf32> to vector<16x1024xbf16>
    %c0_7 = arith.constant 0 : index
    %c0_8 = arith.constant 0 : index
    %12 = vector.load %arg4[%c0_7, %c0_8] : memref<1024x256xbf16, #tpu.memory_space<vmem>>, vector<1024x256xbf16>
    %cst_9 = arith.constant dense<0.000000e+00> : vector<16x256xf32>
    %13 = tpu.matmul %11, %12, %cst_9 {dimension_numbers = #tpu.dot_dimension_numbers<[1], [0], [0], [1], [0, 0, 1, 1], [], []>} : vector<16x1024xbf16>, vector<1024x256xbf16>, vector<16x256xf32> -> vector<16x256xf32>
    %c0_10 = arith.constant 0 : index
    %c0_11 = arith.constant 0 : index
    %14 = vector.load %arg5[%c0_10, %c0_11] : memref<1x256xf32, #tpu.memory_space<vmem>>, vector<1x256xf32>
    %15 = vector.broadcast %14 : vector<1x256xf32> to vector<16x256xf32>
    %16 = arith.addf %13, %15 : vector<16x256xf32>
    %17 = math.absf %16 : vector<16x256xf32>
    %cst_12 = arith.constant 0.000000e+00 : f32
    %18 = vector.broadcast %cst_12 : f32 to vector<16x256xf32>
    %19 = arith.subf %18, %17 : vector<16x256xf32>
    %20 = math.exp %19 : vector<16x256xf32>
    %cst_13 = arith.constant 1.000000e+00 : f32
    %21 = vector.broadcast %cst_13 : f32 to vector<16x256xf32>
    %22 = arith.addf %21, %20 : vector<16x256xf32>
    %23 = tpu.reciprocal %22 {approx = true} : vector<16x256xf32> -> vector<16x256xf32>
    %cst_14 = arith.constant 0.000000e+00 : f32
    %24 = vector.broadcast %cst_14 : f32 to vector<16x256xf32>
    %25 = arith.cmpf oge, %16, %24 : vector<16x256xf32>
    %26 = arith.mulf %20, %23 : vector<16x256xf32>
    %27 = arith.select %25, %23, %26 : vector<16x256xi1>, vector<16x256xf32>
    %c0_15 = arith.constant 0 : index
    %c0_16 = arith.constant 0 : index
    %28 = vector.load %arg6[%c0_15, %c0_16] : memref<16x256xf32, #tpu.memory_space<vmem>>, vector<16x256xf32>
    tpu.vector_store %arg6[%c0_15, %c0_16], %27 {strides = array<i32>} : memref<16x256xf32, #tpu.memory_space<vmem>>, vector<16x256xf32>,
    return
  }
  func.func @transform_0(%arg0: i32) -> (i32, i32) {
    %c0_i32 = arith.constant 0 : i32
    %c0_i32_0 = arith.constant 0 : i32
    return %arg0, %c0_i32 : i32, i32
  }
  func.func @transform_1(%arg0: i32) -> (i32, i32) {
    %c0_i32 = arith.constant 0 : i32
    %c0_i32_0 = arith.constant 0 : i32
    %c0_i32_1 = arith.constant 0 : i32
    return %c0_i32, %c0_i32_0 : i32, i32
  }
  func.func @transform_2(%arg0: i32) -> (i32, i32) {
    %c0_i32 = arith.constant 0 : i32
    %c0_i32_0 = arith.constant 0 : i32
    %c0_i32_1 = arith.constant 0 : i32
    return %c0_i32, %c0_i32_0 : i32, i32
  }
  func.func @transform_3(%arg0: i32) -> (i32, i32) {
    %c0_i32 = arith.constant 0 : i32
    %c0_i32_0 = arith.constant 0 : i32
    %c0_i32_1 = arith.constant 0 : i32
    return %c0_i32, %c0_i32_0 : i32, i32
  }
  func.func @transform_4(%arg0: i32) -> (i32, i32) {
    %c0_i32 = arith.constant 0 : i32
    %c0_i32_0 = arith.constant 0 : i32
    %c0_i32_1 = arith.constant 0 : i32
    return %c0_i32, %c0_i32_0 : i32, i32
  }
  func.func @transform_5(%arg0: i32) -> (i32, i32) {
    %c0_i32 = arith.constant 0 : i32
    %c0_i32_0 = arith.constant 0 : i32
    return %arg0, %c0_i32 : i32, i32
  }
}

</mosaic_0001>

<bundles_post_ra>
// kernel: noise_forward.1
= control target key start
LH: loop header
LB: loop body
LE: loop exit
PB: predicated region body
PF: predicated region fallthrough
CT: control target
= control target key end

     0   :  { %10 = vsyncpa [#allocation3], 0  ;;  %s1956_s0 = inlined_call_operand.vmem [shape: f32[16,32], index: 0, kind: input, shape index: {}]   ;;  %s1957_s1 = inlined_call_operand.hbm [shape: bf16[32,1024], index: 1, kind: input, shape index: {}]   ;;  %s1958_s2 = inlined_call_operand.vmem [shape: f32[1,1024], index: 2, kind: input, shape index: {}]   ;;  %s1959_s3 = inlined_call_operand.hbm [shape: bf16[1024,256], index: 3, kind: input, shape index: {}]   ;;  %s1960_s4 = inlined_call_operand.vmem [shape: f32[1,256], index: 4, kind: input, shape index: {}]   ;;  %s1961_s5 = inlined_call_operand.vmem [shape: f32[16,256], index: 5, kind: output, shape index: {}]  }
   0x1   :  { %11 = vsyncpa [#allocation5], 0  ;;  %s1831_s18 = smov [#allocation2]   ;;  %s1783_s22 = scalar_lea.hbm %s1957_s1, 2048 }
   0x2   :  { %s19_s19 = sshll.u32 %s1831_s18, 4  ;;  %p1784_p0 = scmp.ne.s32.totalorder %s1957_s1, %s1783_s22  ;;  %s20_s19 = int_to_ptr.vmem [resolvable:$true] %s19_s19 }
   0x3   :  { %p1787_p1 = scmp.lt.u32.totalorder %s1783_s22, %s1957_s1 }
   0x5   :  { %p1789_p2 = pnand %p1787_p1, %p1784_p0 }
   0x7   :  { %1792 = shalt.err (!%p1789_p2)
}
   0x8   :  { %s1793_s27 = scalar_lea.vmem %s20_s19, 2048  ;;  %p1798_p4 = scmp.lt.s32.totalorder %s20_s19, %s20_s19 }
   0x9   :  { %p1794_p3 = scmp.ne.s32.totalorder %s20_s19, %s1793_s27  ;;  %p1799_p5 = scmp.lt.s32.totalorder %s1793_s27, %s1793_s27 }
   0xb   :  { %p1800_p6 = por %p1799_p5, %p1798_p4 }
   0xd   :  { %p1801_p7 = pnand %p1800_p6, %p1794_p3 }
   0xf   :  { %1804 = shalt.err (!%p1801_p7)
}
  0x10   :  { %s1832_s28 = smov 512   ;;  %s1833_s29 = smov 32  }
  0x11   :  { %25 = dma.hbm_to_vmem [thread:$0]  %s1957_s1, 2048, %s20_s19, [#allocation3], %s1832_s28, %s1832_s28, %s1833_s29  }
  0x12   :  { %s1834_s7 = smov [#allocation4]   ;;  %s1805_s11 = scalar_lea.hbm %s1959_s3, 16384 }
  0x13   :  { %s33_s8 = sshll.u32 %s1834_s7, 4  ;;  %p1806_p8 = scmp.ne.s32.totalorder %s1959_s3, %s1805_s11  ;;  %s34_s8 = int_to_ptr.vmem [resolvable:$true] %s33_s8 }
  0x14   :  { %p1809_p9 = scmp.lt.u32.totalorder %s1805_s11, %s1959_s3 }
  0x16   :  { %p1811_p10 = pnand %p1809_p9, %p1806_p8 }
  0x18   :  { %1814 = shalt.err (!%p1811_p10)
}
  0x19   :  { %s1815_s16 = scalar_lea.vmem %s34_s8, 16384  ;;  %p1820_p12 = scmp.lt.s32.totalorder %s34_s8, %s34_s8 }
  0x1a   :  { %p1816_p11 = scmp.ne.s32.totalorder %s34_s8, %s1815_s16  ;;  %p1821_p13 = scmp.lt.s32.totalorder %s1815_s16, %s1815_s16 }
  0x1c   :  { %p1822_p0 = por %p1821_p13, %p1820_p12 }
  0x1e   :  { %p1823_p1 = pnand %p1822_p0, %p1816_p11 }
  0x20   :  { %1826 = shalt.err (!%p1823_p1)
}
  0x21   :  { %s1835_s1 = smov 128   ;;  %s1836_s17 = smov 8  }
  0x22   :  { %39 = dma.hbm_to_vmem [thread:$0]  %s1959_s3, 16384, %s34_s8, [#allocation5], %s1835_s1, %s1835_s1, %s1836_s17  }
  0x23   :  { %1827 = dma.done.wait [#allocation3], 2048  }
  0x24   :  { %1828 = vsyncadd [#allocation3], 4294965248 }
  0x25   :  { %1829 = dma.done.wait [#allocation5], 16384  }
  0x26   :  { %1830 = vsyncadd [#allocation5], 4294950912  ;;  %v1837_v0 = vmov 0   ;;  %v52_v1 = vld [vmem:[#allocation2] sm:$0xff]  ;;  %v54_v8 = vld [vmem:[#allocation2 + $0x10] sm:$0xff]  ;;  %vm190_vm0 = vcmask 261120  }
  0x27   :  { %226 = vmatprep.mubr.bf16.mxu0 %v1837_v0  ;;  %269 = vmatprep.mubr.bf16.mxu1 %v1837_v0  ;;  %v56_v2 = vld [vmem:[#allocation2 + $0x20] sm:$0xff]  ;;  %v58_v9 = vld [vmem:[#allocation2 + $0x30] sm:$0xff]  ;;  %v53_v11 = vld [vmem:[#allocation2 + $0x8] sm:$0xff] }
  0x28   :  { %v60_v3 = vld [vmem:[#allocation2 + $0x40] sm:$0xff]  ;;  %v1405_v4 = vcombine.high %v52_v1, %v56_v2  ;;  %v1404_v5 = vcombine.low %v52_v1, %v56_v2  ;;  %v57_v12 = vld [vmem:[#allocation2 + $0x28] sm:$0xff]  ;;  %v1409_v19 = vcombine.high %v54_v8, %v58_v9  ;;  %v62_v20 = vld [vmem:[#allocation2 + $0x50] sm:$0xff]  ;;  %v1408_v27 = vcombine.low %v54_v8, %v58_v9 }
  0x29   :  { %v64_v6 = vld [vmem:[#allocation2 + $0x60] sm:$0xff]  ;;  %v50_v14 = vld [vmem:[%s1956_s0 + $0x8] sm:$0xff]  ;;  %v1407_v15 = vcombine.high %v53_v11, %v57_v12  ;;  %v1406_v16 = vcombine.low %v53_v11, %v57_v12  ;;  %v66_v21 = vld [vmem:[#allocation2 + $0x70] sm:$0xff] }
  0x2a   :  { %v1413_v7 = vcombine.high %v60_v3, %v64_v6  ;;  %194 = vmatprep.subr.bf16.mxu0 %v1405_v4  ;;  %v49_v10 = vld [vmem:[%s1956_s0] sm:$0xff]  ;;  %v1412_v13 = vcombine.low %v60_v3, %v64_v6  ;;  %v61_v17 = vld [vmem:[#allocation2 + $0x48] sm:$0xff]  ;;  %v55_v23 = vld [vmem:[#allocation2 + $0x18] sm:$0xff]  ;;  %v1417_v28 = vcombine.high %v62_v20, %v66_v21  ;;  %v1416_v33 = vcombine.low %v62_v20, %v66_v21 }
  0x2b   :  { %195 = vmatpush1.bf16.msra.mxu0 %v1404_v5  ;;  %v65_v18 = vld [vmem:[#allocation2 + $0x68] sm:$0xff]  ;;  %237 = vmatprep.subr.bf16.mxu1 %v1407_v15  ;;  %v59_v24 = vld [vmem:[#allocation2 + $0x38] sm:$0xff]  ;;  %v51_v25 = vpack.c.bf16 %v50_v14, %v49_v10 }
  0x2c   :  { %196 = vmatprep.subr.bf16.mxu0 %v1413_v7  ;;  %v1415_v22 = vcombine.high %v61_v17, %v65_v18  ;;  %238 = vmatpush1.bf16.msra.mxu1 %v1406_v16  ;;  %v1414_v26 = vcombine.low %v61_v17, %v65_v18  ;;  %v1411_v29 = vcombine.high %v55_v23, %v59_v24  ;;  %v63_v30 = vld [vmem:[#allocation2 + $0x58] sm:$0xff]  ;;  %v1586_v35 = vld [vmem:[#allocation4 + $0x204] ss:$8 sps:$4 sm:$0xff]   ;;  %v1584_v38 = vld [vmem:[#allocation4 + $0x200] ss:$8 sps:$4 sm:$0xff]  }
  0x2d   :  { %v67_v31 = vld [vmem:[#allocation2 + $0x78] sm:$0xff]  ;;  %v1410_v32 = vcombine.low %v55_v23, %v59_v24  ;;  %v1577_v37 = vld [vmem:[#allocation4 + $0x4] ss:$8 sps:$4 sm:$0xff]   ;;  %v1575_v40 = vld [vmem:[#allocation4] ss:$8 sps:$4 sm:$0xff]  }
  0x2e   :  { %239 = vmatprep.subr.bf16.mxu1 %v1415_v22  ;;  %v1419_v34 = vcombine.high %v63_v30, %v67_v31  ;;  %v1418_v36 = vcombine.low %v63_v30, %v67_v31  ;;  %v1592_v39 = vld [vmem:[#allocation4 + $0x214] ss:$8 sps:$4 sm:$0xff]   ;;  %v1590_v42 = vld [vmem:[#allocation4 + $0x210] ss:$8 sps:$4 sm:$0xff]   ;;  %v1598_v43 = vld [vmem:[#allocation4 + $0x224] ss:$8 sps:$4 sm:$0xff]  }
  0x2f   :  { %197 = vmatpush1.bf16.msra.mxu0 %v1412_v13  ;;  %v1580_v41 = vld [vmem:[#allocation4 + $0x14] ss:$8 sps:$4 sm:$0xff]   ;;  %v1578_v44 = vld [vmem:[#allocation4 + $0x10] ss:$8 sps:$4 sm:$0xff]   ;;  %v1583_v45 = vld [vmem:[#allocation4 + $0x24] ss:$8 sps:$4 sm:$0xff]  }
  0x30   :  { %280 = vmatprep.subr.bf16.mxu0 %v1409_v19  ;;  %240 = vmatpush1.bf16.msra.mxu1 %v1414_v26  ;;  %v1596_v46 = vld [vmem:[#allocation4 + $0x220] ss:$8 sps:$4 sm:$0xff]   ;;  %v1604_v47 = vld [vmem:[#allocation4 + $0x234] ss:$8 sps:$4 sm:$0xff]   ;;  %v1602_v50 = vld [vmem:[#allocation4 + $0x230] ss:$8 sps:$4 sm:$0xff]  }
  0x31   :  { %323 = vmatprep.subr.bf16.mxu1 %v1411_v29  ;;  %v1581_v48 = vld [vmem:[#allocation4 + $0x20] ss:$8 sps:$4 sm:$0xff]   ;;  %v1589_v49 = vld [vmem:[#allocation4 + $0x34] ss:$8 sps:$4 sm:$0xff]   ;;  %v1610_v51 = vld [vmem:[#allocation4 + $0x244] ss:$8 sps:$4 sm:$0xff]  }
  0x32   :  { %1420 = vmatmul.mubr.msk.bf16.vlgmr.msra.gmra.mrb[0].mxu0 %vm190_vm0, %v51_v25  ;;  %v1587_v52 = vld [vmem:[#allocation4 + $0x30] ss:$8 sps:$4 sm:$0xff]   ;;  %v1595_v53 = vld [vmem:[#allocation4 + $0x44] ss:$8 sps:$4 sm:$0xff]   ;;  %v1608_v54 = vld [vmem:[#allocation4 + $0x240] ss:$8 sps:$4 sm:$0xff]  }
  0x33   :  { %281 = vmatpush1.bf16.msra.mxu0 %v1408_v27  ;;  %312 = vmatprep.mubr.bf16.mxu0 %v1837_v0  ;;  %v1616_v55 = vld [vmem:[#allocation4 + $0x254] ss:$8 sps:$4 sm:$0xff]   ;;  %v1593_v56 = vld [vmem:[#allocation4 + $0x40] ss:$8 sps:$4 sm:$0xff]   ;;  %v1614_v58 = vld [vmem:[#allocation4 + $0x250] ss:$8 sps:$4 sm:$0xff]  }
  0x34   :  { %282 = vmatprep.subr.bf16.mxu0 %v1417_v28  ;;  %1421 = vmatmul.mubr.msk.bf16.vlgmr.msra.gmra.mrb[0].mxu1 %vm190_vm0, %v51_v25  ;;  %v1601_v57 = vld [vmem:[#allocation4 + $0x54] ss:$8 sps:$4 sm:$0xff]   ;;  %v1599_v59 = vld [vmem:[#allocation4 + $0x50] ss:$8 sps:$4 sm:$0xff]   ;;  %v1622_v60 = vld [vmem:[#allocation4 + $0x264] ss:$8 sps:$4 sm:$0xff]  }
  0x35   :  { %324 = vmatpush1.bf16.msra.mxu1 %v1410_v32  ;;  %355 = vmatprep.mubr.bf16.mxu1 %v1837_v0  ;;  %v1607_v61 = vld [vmem:[#allocation4 + $0x64] ss:$8 sps:$4 sm:$0xff]   ;;  %v1620_v62 = vld [vmem:[#allocation4 + $0x260] ss:$8 sps:$4 sm:$0xff]   ;;  %v1628_v63 = vld [vmem:[#allocation4 + $0x274] ss:$8 sps:$4 sm:$0xff]  }
  0x36   :  { %325 = vmatprep.subr.bf16.mxu1 %v1419_v34  ;;  %v1605_v0 = vld [vmem:[#allocation4 + $0x60] ss:$8 sps:$4 sm:$0xff]   ;;  %v1613_v1 = vld [vmem:[#allocation4 + $0x74] ss:$8 sps:$4 sm:$0xff]   ;;  %v1626_v2 = vld [vmem:[#allocation4 + $0x270] ss:$8 sps:$4 sm:$0xff]  }
  0x37   :  { %283 = vmatpush1.bf16.msra.mxu0 %v1416_v33  ;;  %v1634_v3 = vld [vmem:[#allocation4 + $0x284] ss:$8 sps:$4 sm:$0xff]   ;;  %v1611_v4 = vld [vmem:[#allocation4 + $0x70] ss:$8 sps:$4 sm:$0xff]   ;;  %v1632_v6 = vld [vmem:[#allocation4 + $0x280] ss:$8 sps:$4 sm:$0xff]  }
  0x38   :  { %1272 = vmatprep.subr.bf16.mxu0 %v1586_v35  ;;  %v1619_v5 = vld [vmem:[#allocation4 + $0x84] ss:$8 sps:$4 sm:$0xff]   ;;  %v1640_v7 = vld [vmem:[#allocation4 + $0x294] ss:$8 sps:$4 sm:$0xff]   ;;  %v1617_v8 = vld [vmem:[#allocation4 + $0x80] ss:$8 sps:$4 sm:$0xff]  }
  0x39   :  { %326 = vmatpush1.bf16.msra.mxu1 %v1418_v36  ;;  %v1625_v9 = vld [vmem:[#allocation4 + $0x94] ss:$8 sps:$4 sm:$0xff]   ;;  %v1638_v10 = vld [vmem:[#allocation4 + $0x290] ss:$8 sps:$4 sm:$0xff]   ;;  %v1646_v11 = vld [vmem:[#allocation4 + $0x2a4] ss:$8 sps:$4 sm:$0xff]  }
  0x3a   :  { %1422 = vmatmul.mubr.msk.bf16.vlgmr.msra.gmra.mrb[4].mxu0 %vm190_vm0, %v51_v25  ;;  %1186 = vmatprep.subr.bf16.mxu1 %v1577_v37  ;;  %v1623_v12 = vld [vmem:[#allocation4 + $0x90] ss:$8 sps:$4 sm:$0xff]   ;;  %v1631_v13 = vld [vmem:[#allocation4 + $0xa4] ss:$8 sps:$4 sm:$0xff]   ;;  %v1644_v14 = vld [vmem:[#allocation4 + $0x2a0] ss:$8 sps:$4 sm:$0xff]  }
  0x3b   :  { %1273 = vmatpush1.bf16.msra.mxu0 %v1584_v38  ;;  %v1629_v15 = vld [vmem:[#allocation4 + $0xa0] ss:$8 sps:$4 sm:$0xff]   ;;  %v1637_v16 = vld [vmem:[#allocation4 + $0xb4] ss:$8 sps:$4 sm:$0xff]   ;;  %v1635_v17 = vld [vmem:[#allocation4 + $0xb0] ss:$8 sps:$4 sm:$0xff]   ;;  %v70_v38 = vlaneseq }
  0x3c   :  { %1274 = vmatprep.subr.bf16.mxu0 %v1592_v39  ;;  %1423 = vmatmul.mubr.msk.bf16.vlgmr.msra.gmra.mrb[4].mxu1 %vm190_vm0, %v51_v25  ;;  %v1643_v18 = vld [vmem:[#allocation4 + $0xc4] ss:$8 sps:$4 sm:$0xff]   ;;  %v1641_v19 = vld [vmem:[#allocation4 + $0xc0] ss:$8 sps:$4 sm:$0xff]   ;;  %v1649_v20 = vld [vmem:[#allocation4 + $0xd4] ss:$8 sps:$4 sm:$0xff]  }
  0x3d   :  { %1187 = vmatpush1.bf16.msra.mxu1 %v1575_v40  ;;  %v1652_v21 = vld [vmem:[#allocation4 + $0x2b4] ss:$8 sps:$4 sm:$0xff]   ;;  %v1647_v22 = vld [vmem:[#allocation4 + $0xd0] ss:$8 sps:$4 sm:$0xff]   ;;  %v1655_v24 = vld [vmem:[#allocation4 + $0xe4] ss:$8 sps:$4 sm:$0xff]  }
  0x3e   :  { %1188 = vmatprep.subr.bf16.mxu1 %v1580_v41  ;;  %v1650_v23 = vld [vmem:[#allocation4 + $0x2b0] ss:$8 sps:$4 sm:$0xff]   ;;  %v1658_v25 = vld [vmem:[#allocation4 + $0x2c4] ss:$8 sps:$4 sm:$0xff]   ;;  %v1653_v26 = vld [vmem:[#allocation4 + $0xe0] ss:$8 sps:$4 sm:$0xff]  }
  0x3f   :  { %1275 = vmatpush1.bf16.msra.mxu0 %v1590_v42  ;;  %v1656_v27 = vld [vmem:[#allocation4 + $0x2c0] ss:$8 sps:$4 sm:$0xff]   ;;  %v1661_v28 = vld [vmem:[#allocation4 + $0xf4] ss:$8 sps:$4 sm:$0xff]   ;;  %v1659_v30 = vld [vmem:[#allocation4 + $0xf0] ss:$8 sps:$4 sm:$0xff]  }
  0x40   :  { %1276 = vmatprep.subr.bf16.mxu0 %v1598_v43  ;;  %v1664_v29 = vld [vmem:[#allocation4 + $0x2d4] ss:$8 sps:$4 sm:$0xff]   ;;  %v1662_v31 = vld [vmem:[#allocation4 + $0x2d0] ss:$8 sps:$4 sm:$0xff]   ;;  %v1667_v32 = vld [vmem:[#allocation4 + $0x104] ss:$8 sps:$4 sm:$0xff]  }
  0x41   :  { %1189 = vmatpush1.bf16.msra.mxu1 %v1578_v44  ;;  %v1670_v33 = vld [vmem:[#allocation4 + $0x2e4] ss:$8 sps:$4 sm:$0xff]   ;;  %v1668_v34 = vld [vmem:[#allocation4 + $0x2e0] ss:$8 sps:$4 sm:$0xff]   ;;  %v1676_v35 = vld [vmem:[#allocation4 + $0x2f4] ss:$8 sps:$4 sm:$0xff]  }
  0x42   :  { %1190 = vmatprep.subr.bf16.mxu1 %v1583_v45  ;;  %v1674_v36 = vld [vmem:[#allocation4 + $0x2f0] ss:$8 sps:$4 sm:$0xff]   ;;  %v1682_v37 = vld [vmem:[#allocation4 + $0x304] ss:$8 sps:$4 sm:$0xff]   ;;  %v1902_v39 = vshrl.u32 %v70_v38, 7 }
  0x43   :  { %1277 = vmatpush1.bf16.msra.mxu0 %v1596_v46  ;;  %v68_v41 = vld [vmem:[%s1958_s2] sm:$0xff] }
  0x44   :  { %1278 = vmatprep.subr.bf16.mxu0 %v1604_v47  ;;  %v72_v40 = vsub.s32 0, %v1902_v39  ;;  %v76_v42 = vsub.s32 1, %v1902_v39  ;;  %v80_v43 = vsub.s32 2, %v1902_v39  ;;  %v84_v45 = vsub.s32 3, %v1902_v39 }
  0x45   :  { %1191 = vmatpush1.bf16.msra.mxu1 %v1581_v48  ;;  %v88_v48 = vsub.s32 4, %v1902_v39 }
  0x46   :  { %1192 = vmatprep.subr.bf16.mxu1 %v1589_v49  ;;  %v73_v44 = vrot.slane %v68_v41, %v72_v40  ;;  %v77_v46 = vrot.slane %v68_v41, %v76_v42  ;;  %v81_v49 = vrot.slane %v68_v41, %v80_v43 }
  0x47   :  { %1279 = vmatpush1.bf16.msra.mxu0 %v1602_v50 }
  0x48   :  { %1280 = vmatprep.subr.bf16.mxu0 %v1610_v51 }
  0x49   :  { %1193 = vmatpush1.bf16.msra.mxu1 %v1587_v52  ;;  %v92_v52 = vsub.s32 5, %v1902_v39 }
  0x4a   :  { %1194 = vmatprep.subr.bf16.mxu1 %v1595_v53  ;;  %v85_v53 = vrot.slane %v68_v41, %v84_v45 }
  0x4b   :  { %1281 = vmatpush1.bf16.msra.mxu0 %v1608_v54  ;;  %v96_v54 = vsub.s32 6, %v1902_v39 }
  0x4c   :  { %1282 = vmatprep.subr.bf16.mxu0 %v1616_v55 }
  0x4d   :  { %1195 = vmatpush1.bf16.msra.mxu1 %v1593_v56 }
  0x4e   :  { %1196 = vmatprep.subr.bf16.mxu1 %v1601_v57  ;;  %v100_v57 = vsub.s32 7, %v1902_v39 }
  0x4f   :  { %1283 = vmatpush1.bf16.msra.mxu0 %v1614_v58 }
  0x50   :  { %1284 = vmatprep.subr.bf16.mxu0 %v1622_v60 }
  0x51   :  { %1197 = vmatpush1.bf16.msra.mxu1 %v1599_v59 }
  0x52   :  { %1198 = vmatprep.subr.bf16.mxu1 %v1607_v61 }
  0x53   :  { %1285 = vmatpush1.bf16.msra.mxu0 %v1620_v62 }
  0x54   :  { %1286 = vmatprep.subr.bf16.mxu0 %v1628_v63 }
  0x55   :  { %1199 = vmatpush1.bf16.msra.mxu1 %v1605_v0  ;;  %v89_v0 = vrot.slane %v68_v41, %v88_v48 }
  0x56   :  { %1200 = vmatprep.subr.bf16.mxu1 %v1613_v1 }
  0x57   :  { %1287 = vmatpush1.bf16.msra.mxu0 %v1626_v2 }
  0x58   :  { %1288 = vmatprep.subr.bf16.mxu0 %v1634_v3 }
  0x59   :  { %1201 = vmatpush1.bf16.msra.mxu1 %v1611_v4  ;;  %v93_v4 = vrot.slane %v68_v41, %v92_v52 }
  0x5a   :  { %1202 = vmatprep.subr.bf16.mxu1 %v1619_v5 }
  0x5b   :  { %1289 = vmatpush1.bf16.msra.mxu0 %v1632_v6 }
  0x5c   :  { %1290 = vmatprep.subr.bf16.mxu0 %v1640_v7  ;;  %v97_v7 = vrot.slane %v68_v41, %v96_v54 }
  0x5d   :  { %1203 = vmatpush1.bf16.msra.mxu1 %v1617_v8 }
  0x5e   :  { %1204 = vmatprep.subr.bf16.mxu1 %v1625_v9 }
  0x5f   :  { %1291 = vmatpush1.bf16.msra.mxu0 %v1638_v10 }
  0x60   :  { %1292 = vmatprep.subr.bf16.mxu0 %v1646_v11 }
  0x61   :  { %1205 = vmatpush1.bf16.msra.mxu1 %v1623_v12  ;;  %v101_v12 = vrot.slane %v68_v41, %v100_v57  ;;  %v1679_v57 = vld [vmem:[#allocation4 + $0x124] ss:$8 sps:$4 sm:$0xff]  }
  0x62   :  { %1206 = vmatprep.subr.bf16.mxu1 %v1631_v13 }
  0x63   :  { %1293 = vmatpush1.bf16.msra.mxu0 %v1644_v14 }
  0x64   :  { %1294 = vmatprep.subr.bf16.mxu0 %v1652_v21 }
  0x65   :  { %1207 = vmatpush1.bf16.msra.mxu1 %v1629_v15 }
  0x66   :  { %1208 = vmatprep.subr.bf16.mxu1 %v1637_v16 }
  0x67   :  { %1295 = vmatpush1.bf16.msra.mxu0 %v1650_v23 }
  0x68   :  { %1296 = vmatprep.subr.bf16.mxu0 %v1658_v25 }
  0x69   :  { %1209 = vmatpush1.bf16.msra.mxu1 %v1635_v17 }
  0x6a   :  { %1210 = vmatprep.subr.bf16.mxu1 %v1643_v18 }
  0x6b   :  { %1297 = vmatpush1.bf16.msra.mxu0 %v1656_v27 }
  0x6c   :  { %1298 = vmatprep.subr.bf16.mxu0 %v1664_v29 }
  0x6d   :  { %1211 = vmatpush1.bf16.msra.mxu1 %v1641_v19 }
  0x6e   :  { %1212 = vmatprep.subr.bf16.mxu1 %v1649_v20 }
  0x6f   :  { %1299 = vmatpush1.bf16.msra.mxu0 %v1662_v31 }
  0x70   :  { %1300 = vmatprep.subr.bf16.mxu0 %v1670_v33 }
  0x71   :  { %1213 = vmatpush1.bf16.msra.mxu1 %v1647_v22 }
  0x72   :  { %1214 = vmatprep.subr.bf16.mxu1 %v1655_v24 }
  0x73   :  { %1301 = vmatpush1.bf16.msra.mxu0 %v1668_v34 }
  0x74   :  { %1302 = vmatprep.subr.bf16.mxu0 %v1676_v35  ;;  %v1673_v35 = vld [vmem:[#allocation4 + $0x114] ss:$8 sps:$4 sm:$0xff]  }
  0x75   :  { %1215 = vmatpush1.bf16.msra.mxu1 %v1653_v26 }
  0x76   :  { %1216 = vmatprep.subr.bf16.mxu1 %v1661_v28 }
  0x77   :  { %1303 = vmatpush1.bf16.msra.mxu0 %v1674_v36 }
  0x78   :  { %1315 = vmatprep.subr.bf16.mxu0 %v1682_v37 }
  0x79   :  { %1217 = vmatpush1.bf16.msra.mxu1 %v1659_v30  ;;  %v1665_v30 = vld [vmem:[#allocation4 + $0x100] ss:$8 sps:$4 sm:$0xff]  }
  0x7a   :  { %1229 = vmatprep.subr.bf16.mxu1 %v1667_v32 }
 0x105   :  { %v228_v47 = vpop.f32.mrb[0].mxu0 }
 0x106   :  { %v229_v50 = vadd.f32 %v228_v47, %v73_v44  ;;  %v230_v51 = vpop.f32.mrb[1].mxu0 }
 0x107   :  { %v231_v55 = vadd.f32 %v230_v51, %v77_v46  ;;  %v232_v56 = vpop.f32.mrb[2].mxu0  ;;  %v271_v61 = vpop.f32.mrb[0].mxu1  ;;  %v1671_v51 = vld [vmem:[#allocation4 + $0x110] ss:$8 sps:$4 sm:$0xff]  }
 0x108   :  { %v366_v58 = vmax.f32 %v229_v50, 0.0  ;;  %v233_v59 = vadd.f32 %v232_v56, %v73_v44  ;;  %v234_v60 = vpop.f32.mrb[3].mxu0  ;;  %v272_v1 = vadd.f32 %v271_v61, %v81_v49  ;;  %v273_v2 = vpop.f32.mrb[1].mxu1 }
 0x109   :  { %v367_v62 = vmax.f32 %v231_v55, 0.0  ;;  %v235_v63 = vadd.f32 %v234_v60, %v77_v46  ;;  %v274_v5 = vadd.f32 %v273_v2, %v85_v53  ;;  %v275_v6 = vpop.f32.mrb[2].mxu1 }
 0x10a   :  { %v374_v3 = vmax.f32 %v233_v59, 0.0  ;;  %v368_v9 = vmax.f32 %v272_v1, 0.0  ;;  %v276_v10 = vadd.f32 %v275_v6, %v81_v49  ;;  %v277_v11 = vpop.f32.mrb[3].mxu1  ;;  %v382_v13 = vmin.f32 %v366_v58, 6.0 }
 0x10b   :  { %v375_v8 = vmax.f32 %v235_v63, 0.0  ;;  %v369_v15 = vmax.f32 %v274_v5, 0.0  ;;  %v278_v16 = vadd.f32 %v277_v11, %v85_v53  ;;  %v383_v17 = vmin.f32 %v367_v62, 6.0  ;;  %v1680_v5 = vld [vmem:[#allocation4 + $0x300] ss:$8 sps:$4 sm:$0xff]  }
 0x10c   :  { %v390_v14 = vmin.f32 %v374_v3, 6.0  ;;  %v1919_v20 = vmin.f32 %v368_v9, 6.0  ;;  %v376_v21 = vmax.f32 %v276_v10, 0.0 }
 0x10d   :  { %v391_v18 = vmin.f32 %v375_v8, 6.0  ;;  %v314_v19 = vpop.f32.mrb[4].mxu0  ;;  %v385_v25 = vmin.f32 %v369_v15, 6.0  ;;  %v377_v26 = vmax.f32 %v278_v16, 0.0  ;;  %v1688_v8 = vld [vmem:[#allocation4 + $0x314] ss:$8 sps:$4 sm:$0xff]  }
 0x10e   :  { %v398_v22 = vpack.c.bf16 %v390_v14, %v382_v13  ;;  %v315_v23 = vadd.f32 %v314_v19, %v89_v0  ;;  %v316_v24 = vpop.f32.mrb[5].mxu0  ;;  %v1921_v31 = vmin.f32 %v376_v21, 6.0  ;;  %v1686_v13 = vld [vmem:[#allocation4 + $0x310] ss:$8 sps:$4 sm:$0xff]   ;;  %v1691_v14 = vld [vmem:[#allocation4 + $0x144] ss:$8 sps:$4 sm:$0xff]  }
 0x10f   :  { %v399_v27 = vpack.c.bf16 %v391_v18, %v383_v17  ;;  %v317_v28 = vadd.f32 %v316_v24, %v93_v4  ;;  %v318_v29 = vpop.f32.mrb[6].mxu0  ;;  %v393_v36 = vmin.f32 %v377_v26, 6.0  ;;  %v357_v37 = vpop.f32.mrb[4].mxu1  ;;  %v1694_v15 = vld [vmem:[#allocation4 + $0x324] ss:$8 sps:$4 sm:$0xff]  }
 0x110   :  { %v370_v32 = vmax.f32 %v315_v23, 0.0  ;;  %v319_v33 = vadd.f32 %v318_v29, %v89_v0  ;;  %v320_v34 = vpop.f32.mrb[7].mxu0  ;;  %v400_v43 = vpack.c.bf16 %v1921_v31, %v1919_v20  ;;  %v358_v44 = vadd.f32 %v357_v37, %v97_v7  ;;  %v359_v45 = vpop.f32.mrb[5].mxu1  ;;  %v1689_v16 = vld [vmem:[#allocation4 + $0x140] ss:$8 sps:$4 sm:$0xff]  }
 0x111   :  { %v371_v38 = vmax.f32 %v317_v28, 0.0  ;;  %v321_v41 = vadd.f32 %v320_v34, %v93_v4  ;;  %1218 = vmatprep.mubr.bf16.mxu1 %v399_v27  ;;  %v401_v47 = vpack.c.bf16 %v393_v36, %v385_v25  ;;  %v360_v48 = vadd.f32 %v359_v45, %v101_v12  ;;  %v361_v49 = vpop.f32.mrb[6].mxu1  ;;  %v1677_v4 = vld [vmem:[#allocation4 + $0x120] ss:$8 sps:$4 sm:$0xff]   ;;  %v1697_v18 = vld [vmem:[#allocation4 + $0x154] ss:$8 sps:$4 sm:$0xff]  }
 0x112   :  { %v378_v46 = vmax.f32 %v319_v33, 0.0  ;;  %1219 = vmatmul.mubr.bf16.vlgmr.msra.gmra.mrb[8].mxu1 %v398_v22  ;;  %v372_v52 = vmax.f32 %v358_v44, 0.0  ;;  %v362_v53 = vadd.f32 %v361_v49, %v97_v7  ;;  %v363_v54 = vpop.f32.mrb[7].mxu1  ;;  %v386_v55 = vmin.f32 %v370_v32, 6.0  ;;  %v1685_v7 = vld [vmem:[#allocation4 + $0x134] ss:$8 sps:$4 sm:$0xff]  }
 0x113   :  { %v379_v50 = vmax.f32 %v321_v41, 0.0  ;;  %1230 = vmatpush1.bf16.msra.mxu1 %v1665_v30  ;;  %v373_v58 = vmax.f32 %v360_v48, 0.0  ;;  %v364_v59 = vadd.f32 %v363_v54, %v101_v12  ;;  %1261 = vmatprep.mubr.bf16.mxu1 %v401_v47  ;;  %v387_v60 = vmin.f32 %v371_v38, 6.0  ;;  %v1683_v12 = vld [vmem:[#allocation4 + $0x130] ss:$8 sps:$4 sm:$0xff]  }
 0x114   :  { %v394_v56 = vmin.f32 %v378_v46, 6.0  ;;  %1231 = vmatprep.subr.bf16.mxu1 %v1673_v35  ;;  %v1925_v62 = vmin.f32 %v372_v52, 6.0  ;;  %v380_v63 = vmax.f32 %v362_v53, 0.0  ;;  %v1692_v17 = vld [vmem:[#allocation4 + $0x320] ss:$8 sps:$4 sm:$0xff]  }
 0x115   :  { %v395_v61 = vmin.f32 %v379_v50, 6.0  ;;  %v389_v1 = vmin.f32 %v373_v58, 6.0  ;;  %v381_v2 = vmax.f32 %v364_v59, 0.0  ;;  %v1700_v19 = vld [vmem:[#allocation4 + $0x334] ss:$8 sps:$4 sm:$0xff]  }
 0x116   :  { %v402_v0 = vpack.c.bf16 %v394_v56, %v386_v55  ;;  %v1927_v6 = vmin.f32 %v380_v63, 6.0  ;;  %v1695_v21 = vld [vmem:[#allocation4 + $0x150] ss:$8 sps:$4 sm:$0xff]   ;;  %v1703_v23 = vld [vmem:[#allocation4 + $0x164] ss:$8 sps:$4 sm:$0xff]  }
 0x117   :  { %v403_v3 = vpack.c.bf16 %v395_v61, %v387_v60  ;;  %1232 = vmatpush1.bf16.msra.mxu1 %v1671_v51  ;;  %v397_v9 = vmin.f32 %v381_v2, 6.0  ;;  %v1698_v22 = vld [vmem:[#allocation4 + $0x330] ss:$8 sps:$4 sm:$0xff]   ;;  %v1706_v24 = vld [vmem:[#allocation4 + $0x344] ss:$8 sps:$4 sm:$0xff]  }
 0x118   :  { %1233 = vmatprep.subr.bf16.mxu1 %v1679_v57  ;;  %v404_v10 = vpack.c.bf16 %v1927_v6, %v1925_v62  ;;  %v1701_v25 = vld [vmem:[#allocation4 + $0x160] ss:$8 sps:$4 sm:$0xff]   ;;  %v1709_v27 = vld [vmem:[#allocation4 + $0x174] ss:$8 sps:$4 sm:$0xff]   ;;  %v1707_v29 = vld [vmem:[#allocation4 + $0x170] ss:$8 sps:$4 sm:$0xff]  }
 0x119   :  { %1304 = vmatprep.mubr.bf16.mxu0 %v403_v3  ;;  %v405_v11 = vpack.c.bf16 %v397_v9, %v389_v1  ;;  %v1704_v26 = vld [vmem:[#allocation4 + $0x340] ss:$8 sps:$4 sm:$0xff]   ;;  %v1712_v28 = vld [vmem:[#allocation4 + $0x354] ss:$8 sps:$4 sm:$0xff]   ;;  %v1710_v30 = vld [vmem:[#allocation4 + $0x350] ss:$8 sps:$4 sm:$0xff]  }
 0x11a   :  { %1305 = vmatmul.mubr.bf16.vlgmr.msra.gmra.mrb[8].mxu0 %v402_v0  ;;  %v1715_v32 = vld [vmem:[#allocation4 + $0x184] ss:$8 sps:$4 sm:$0xff]   ;;  %v1713_v34 = vld [vmem:[#allocation4 + $0x180] ss:$8 sps:$4 sm:$0xff]   ;;  %v1721_v36 = vld [vmem:[#allocation4 + $0x194] ss:$8 sps:$4 sm:$0xff]  }
 0x11b   :  { %1234 = vmatpush1.bf16.msra.mxu1 %v1677_v4  ;;  %1316 = vmatpush1.bf16.msra.mxu0 %v1680_v5  ;;  %v1718_v33 = vld [vmem:[#allocation4 + $0x364] ss:$8 sps:$4 sm:$0xff]   ;;  %v1716_v35 = vld [vmem:[#allocation4 + $0x360] ss:$8 sps:$4 sm:$0xff]   ;;  %v1724_v37 = vld [vmem:[#allocation4 + $0x374] ss:$8 sps:$4 sm:$0xff]  }
 0x11c   :  { %1235 = vmatprep.subr.bf16.mxu1 %v1685_v7  ;;  %1317 = vmatprep.subr.bf16.mxu0 %v1688_v8  ;;  %v1719_v38 = vld [vmem:[#allocation4 + $0x190] ss:$8 sps:$4 sm:$0xff]   ;;  %v1727_v44 = vld [vmem:[#allocation4 + $0x1a4] ss:$8 sps:$4 sm:$0xff]   ;;  %v1725_v46 = vld [vmem:[#allocation4 + $0x1a0] ss:$8 sps:$4 sm:$0xff]  }
 0x11d   :  { %1347 = vmatprep.mubr.bf16.mxu0 %v405_v11  ;;  %v1722_v41 = vld [vmem:[#allocation4 + $0x370] ss:$8 sps:$4 sm:$0xff]   ;;  %v1730_v45 = vld [vmem:[#allocation4 + $0x384] ss:$8 sps:$4 sm:$0xff]   ;;  %v1728_v47 = vld [vmem:[#allocation4 + $0x380] ss:$8 sps:$4 sm:$0xff]  }
 0x11e   :  { %v1733_v48 = vld [vmem:[#allocation4 + $0x1b4] ss:$8 sps:$4 sm:$0xff]   ;;  %v1731_v50 = vld [vmem:[#allocation4 + $0x1b0] ss:$8 sps:$4 sm:$0xff]   ;;  %v1739_v52 = vld [vmem:[#allocation4 + $0x1c4] ss:$8 sps:$4 sm:$0xff]  }
 0x11f   :  { %1236 = vmatpush1.bf16.msra.mxu1 %v1683_v12  ;;  %1318 = vmatpush1.bf16.msra.mxu0 %v1686_v13  ;;  %v1736_v49 = vld [vmem:[#allocation4 + $0x394] ss:$8 sps:$4 sm:$0xff]   ;;  %v1734_v51 = vld [vmem:[#allocation4 + $0x390] ss:$8 sps:$4 sm:$0xff]   ;;  %v1742_v53 = vld [vmem:[#allocation4 + $0x3a4] ss:$8 sps:$4 sm:$0xff]  }
 0x120   :  { %1237 = vmatprep.subr.bf16.mxu1 %v1691_v14  ;;  %1319 = vmatprep.subr.bf16.mxu0 %v1694_v15  ;;  %v1737_v54 = vld [vmem:[#allocation4 + $0x1c0] ss:$8 sps:$4 sm:$0xff]   ;;  %v1745_v56 = vld [vmem:[#allocation4 + $0x1d4] ss:$8 sps:$4 sm:$0xff]   ;;  %v1743_v58 = vld [vmem:[#allocation4 + $0x1d0] ss:$8 sps:$4 sm:$0xff]  }
 0x121   :  { %v1740_v55 = vld [vmem:[#allocation4 + $0x3a0] ss:$8 sps:$4 sm:$0xff]   ;;  %v1748_v57 = vld [vmem:[#allocation4 + $0x3b4] ss:$8 sps:$4 sm:$0xff]   ;;  %v1746_v59 = vld [vmem:[#allocation4 + $0x3b0] ss:$8 sps:$4 sm:$0xff]  }
 0x122   :  { %v1751_v60 = vld [vmem:[#allocation4 + $0x1e4] ss:$8 sps:$4 sm:$0xff]   ;;  %v1749_v63 = vld [vmem:[#allocation4 + $0x1e0] ss:$8 sps:$4 sm:$0xff]   ;;  %v1757_v1 = vld [vmem:[#allocation4 + $0x1f4] ss:$8 sps:$4 sm:$0xff]  }
 0x123   :  { %1238 = vmatpush1.bf16.msra.mxu1 %v1689_v16  ;;  %1320 = vmatpush1.bf16.msra.mxu0 %v1692_v17  ;;  %v1754_v61 = vld [vmem:[#allocation4 + $0x3c4] ss:$8 sps:$4 sm:$0xff]   ;;  %v1752_v0 = vld [vmem:[#allocation4 + $0x3c0] ss:$8 sps:$4 sm:$0xff]   ;;  %v1760_v2 = vld [vmem:[#allocation4 + $0x3d4] ss:$8 sps:$4 sm:$0xff]  }
 0x124   :  { %1239 = vmatprep.subr.bf16.mxu1 %v1697_v18  ;;  %1321 = vmatprep.subr.bf16.mxu0 %v1700_v19  ;;  %v1755_v3 = vld [vmem:[#allocation4 + $0x1f0] ss:$8 sps:$4 sm:$0xff]   ;;  %v1763_v5 = vld [vmem:[#allocation4 + $0x3e4] ss:$8 sps:$4 sm:$0xff]   ;;  %v1761_v7 = vld [vmem:[#allocation4 + $0x3e0] ss:$8 sps:$4 sm:$0xff]  }
 0x125   :  { %v1758_v4 = vld [vmem:[#allocation4 + $0x3d0] ss:$8 sps:$4 sm:$0xff]   ;;  %v1766_v8 = vld [vmem:[#allocation4 + $0x3f4] ss:$8 sps:$4 sm:$0xff]   ;;  %v534_v11 = vld [vmem:[%s1960_s4] sm:$0x3] }
 0x126   :  { %v1764_v9 = vld [vmem:[#allocation4 + $0x3f0] ss:$8 sps:$4 sm:$0xff]   ;;  %v539_v15 = vrot.slane %v534_v11, %v72_v40  ;;  %v543_v31 = vrot.slane %v534_v11, %v76_v42 }
 0x127   :  { %1240 = vmatpush1.bf16.msra.mxu1 %v1695_v21  ;;  %1322 = vmatpush1.bf16.msra.mxu0 %v1698_v22 }
 0x128   :  { %1241 = vmatprep.subr.bf16.mxu1 %v1703_v23  ;;  %1323 = vmatprep.subr.bf16.mxu0 %v1706_v24 }
 0x12b   :  { %1242 = vmatpush1.bf16.msra.mxu1 %v1701_v25  ;;  %1324 = vmatpush1.bf16.msra.mxu0 %v1704_v26 }
 0x12c   :  { %1243 = vmatprep.subr.bf16.mxu1 %v1709_v27  ;;  %1325 = vmatprep.subr.bf16.mxu0 %v1712_v28 }
 0x12f   :  { %1244 = vmatpush1.bf16.msra.mxu1 %v1707_v29  ;;  %1326 = vmatpush1.bf16.msra.mxu0 %v1710_v30 }
 0x130   :  { %1245 = vmatprep.subr.bf16.mxu1 %v1715_v32  ;;  %1327 = vmatprep.subr.bf16.mxu0 %v1718_v33 }
 0x133   :  { %1246 = vmatpush1.bf16.msra.mxu1 %v1713_v34  ;;  %1328 = vmatpush1.bf16.msra.mxu0 %v1716_v35 }
 0x134   :  { %1247 = vmatprep.subr.bf16.mxu1 %v1721_v36  ;;  %1329 = vmatprep.subr.bf16.mxu0 %v1724_v37 }
 0x137   :  { %1248 = vmatpush1.bf16.msra.mxu1 %v1719_v38  ;;  %1330 = vmatpush1.bf16.msra.mxu0 %v1722_v41 }
 0x138   :  { %1249 = vmatprep.subr.bf16.mxu1 %v1727_v44  ;;  %1331 = vmatprep.subr.bf16.mxu0 %v1730_v45 }
 0x13b   :  { %1250 = vmatpush1.bf16.msra.mxu1 %v1725_v46  ;;  %1332 = vmatpush1.bf16.msra.mxu0 %v1728_v47 }
 0x13c   :  { %1251 = vmatprep.subr.bf16.mxu1 %v1733_v48  ;;  %1333 = vmatprep.subr.bf16.mxu0 %v1736_v49 }
 0x13f   :  { %1252 = vmatpush1.bf16.msra.mxu1 %v1731_v50  ;;  %1334 = vmatpush1.bf16.msra.mxu0 %v1734_v51 }
 0x140   :  { %1253 = vmatprep.subr.bf16.mxu1 %v1739_v52  ;;  %1335 = vmatprep.subr.bf16.mxu0 %v1742_v53 }
 0x143   :  { %1254 = vmatpush1.bf16.msra.mxu1 %v1737_v54  ;;  %1336 = vmatpush1.bf16.msra.mxu0 %v1740_v55 }
 0x144   :  { %1255 = vmatprep.subr.bf16.mxu1 %v1745_v56  ;;  %1337 = vmatprep.subr.bf16.mxu0 %v1748_v57 }
 0x147   :  { %1256 = vmatpush1.bf16.msra.mxu1 %v1743_v58  ;;  %1338 = vmatpush1.bf16.msra.mxu0 %v1746_v59 }
 0x148   :  { %1257 = vmatprep.subr.bf16.mxu1 %v1751_v60  ;;  %1339 = vmatprep.subr.bf16.mxu0 %v1754_v61 }
 0x14b   :  { %1258 = vmatpush1.bf16.msra.mxu1 %v1749_v63  ;;  %1340 = vmatpush1.bf16.msra.mxu0 %v1752_v0 }
 0x14c   :  { %1259 = vmatprep.subr.bf16.mxu1 %v1757_v1  ;;  %1341 = vmatprep.subr.bf16.mxu0 %v1760_v2 }
 0x14f   :  { %1260 = vmatpush1.bf16.msra.mxu1 %v1755_v3  ;;  %1342 = vmatpush1.bf16.msra.mxu0 %v1758_v4 }
 0x150   :  { %1343 = vmatprep.subr.bf16.mxu0 %v1763_v5 }
 0x152   :  { %1262 = vmatmul.mubr.bf16.vlgmr.msra.gmra.mrb[8].mxu1 %v400_v43 }
 0x153   :  { %1344 = vmatpush1.bf16.msra.mxu0 %v1761_v7 }
 0x154   :  { %1345 = vmatprep.subr.bf16.mxu0 %v1766_v8 }
 0x157   :  { %1346 = vmatpush1.bf16.msra.mxu0 %v1764_v9 }
 0x15a   :  { %1348 = vmatmul.mubr.bf16.vlgmr.msra.gmra.mrb[8].mxu0 %v404_v10 }
 0x225   :  { %v1263_v12 = vpop.f32.mrb[8].mxu1 }
 0x226   :  { %v1265_v13 = vpop.f32.mrb[9].mxu1  ;;  %v1552_v43 = vadd.f32 %v1263_v12, %v539_v15 }
 0x227   :  { %v1267_v14 = vpop.f32.mrb[10].mxu1  ;;  %v1554_v16 = vadd.f32 %v1265_v13, %v543_v31 }
 0x228   :  { %v1269_v20 = vpop.f32.mrb[11].mxu1  ;;  %v1556_v18 = vadd.f32 %v1267_v14, %v539_v15 }
 0x229   :  { %v1558_v10 = vadd.f32 %v1269_v20, %v543_v31 }
 0x22d   :  { %v1349_v17 = vpop.f32.mrb[8].mxu0 }
 0x22e   :  { %v1553_v62 = vadd.f32 %v1552_v43, %v1349_v17  ;;  %v1351_v6 = vpop.f32.mrb[9].mxu0 }
 0x22f   :  { %v1555_v19 = vadd.f32 %v1554_v16, %v1351_v6  ;;  %v1353_v21 = vpop.f32.mrb[10].mxu0 }
 0x230   :  { %v1358_v22 = vand.u32 2147483647, %v1553_v62  ;;  %v1557_v23 = vadd.f32 %v1556_v18, %v1353_v21  ;;  %v1355_v24 = vpop.f32.mrb[11].mxu0  ;;  %vm1382_vm1 = vcmp.ge.f32.partialorder %v1553_v62, 0.0 }
 0x231   :  { %v1359_v25 = vand.u32 2147483647, %v1555_v19  ;;  %v1559_v26 = vadd.f32 %v1558_v10, %v1355_v24  ;;  %vm1383_vm2 = vcmp.ge.f32.partialorder %v1555_v19, 0.0 }
 0x232   :  { %v1362_v27 = vsub.f32 0.0, %v1358_v22  ;;  %v1360_v40 = vand.u32 2147483647, %v1557_v23  ;;  %vm1384_vm3 = vcmp.ge.f32.partialorder %v1557_v23, 0.0 }
 0x233   :  { %v1363_v28 = vsub.f32 0.0, %v1359_v25  ;;  %v1361_v29 = vand.u32 2147483647, %v1559_v26  ;;  %vm1385_vm4 = vcmp.ge.f32.partialorder %v1559_v26, 0.0 }
 0x234   :  { %v1366_v39 = vmul.f32 1.442695, %v1362_v27  ;;  %v1364_v42 = vsub.f32 0.0, %v1360_v40 }
 0x235   :  { %v1368_v30 = vmul.f32 1.442695, %v1363_v28  ;;  %v1365_v32 = vsub.f32 0.0, %v1361_v29 }
 0x236   :  { %1767 = vpow2.f32 %v1366_v39  ;;  %v1370_v33 = vmul.f32 1.442695, %v1364_v42 }
 0x237   :  { %1769 = vpow2.f32 %v1368_v30  ;;  %v1372_v34 = vmul.f32 1.442695, %v1365_v32 }
 0x238   :  { %1771 = vpow2.f32 %v1370_v33 }
 0x239   :  { %1773 = vpow2.f32 %v1372_v34 }
 0x240   :  { %v1768_v35 = vpop.eup %1767 }
 0x241   :  { %v1770_v36 = vpop.eup %1769  ;;  %v1374_v37 = vadd.f32 1.0, %v1768_v35 }
 0x242   :  { %v1772_v38 = vpop.eup %1771  ;;  %v1375_v41 = vadd.f32 1.0, %v1770_v36 }
 0x243   :  { %v1774_v44 = vpop.eup %1773  ;;  %1775 = vrcp.f32 %v1374_v37  ;;  %v1376_v45 = vadd.f32 1.0, %v1772_v38 }
 0x244   :  { %1777 = vrcp.f32 %v1375_v41  ;;  %v1377_v46 = vadd.f32 1.0, %v1774_v44 }
 0x245   :  { %1779 = vrcp.f32 %v1376_v45 }
 0x246   :  { %1781 = vrcp.f32 %v1377_v46 }
 0x24d   :  { %v1776_v47 = vpop.eup %1775 }
 0x24e   :  { %v1778_v48 = vpop.eup %1777  ;;  %v1386_v49 = vmul.f32 %v1776_v47, %v1768_v35 }
 0x24f   :  { %v1780_v50 = vpop.eup %1779  ;;  %v1387_v51 = vmul.f32 %v1778_v48, %v1770_v36 }
 0x250   :  { %v1782_v52 = vpop.eup %1781  ;;  %v1390_v53 = vsel %vm1382_vm1, %v1776_v47, %v1386_v49  ;;  %v1388_v54 = vmul.f32 %v1780_v50, %v1772_v38 }
 0x251   :  { %1394 = vst [vmem:[%s1961_s5] sm:$0xff] %v1390_v53  ;;  %v1391_v55 = vsel %vm1383_vm2, %v1778_v48, %v1387_v51  ;;  %v1389_v56 = vmul.f32 %v1782_v52, %v1774_v44 }
 0x252   :  { %1395 = vst [vmem:[%s1961_s5 + $0x8] sm:$0xff] %v1391_v55  ;;  %v1392_v57 = vsel %vm1384_vm3, %v1780_v50, %v1388_v54 }
 0x253   :  { %1396 = vst [vmem:[%s1961_s5 + $0x10] sm:$0xff] %v1392_v57  ;;  %v1393_v58 = vsel %vm1385_vm4, %v1782_v52, %v1389_v56 }
 0x254   :  { %1397 = vst [vmem:[%s1961_s5 + $0x18] sm:$0xff] %v1393_v58 }
 0x255   :  { %1402 = vsyncpa [#allocation3], 1 }
 0x256   :  { %1403 = vsyncpa [#allocation5], 1 }

// kernel: noise_forward.1
= control target key start
LH: loop header
LB: loop body
LE: loop exit
PB: predicated region body
PF: predicated region fallthrough
CT: control target
= control target key end

     0   :  { %10 = vsyncpa [#allocation3], 0  ;;  %s1956_s0 = inlined_call_operand.vmem [shape: f32[16,32], index: 0, kind: input, shape index: {}]   ;;  %s1957_s1 = inlined_call_operand.hbm [shape: bf16[32,1024], index: 1, kind: input, shape index: {}]   ;;  %s1958_s2 = inlined_call_operand.vmem [shape: f32[1,1024], index: 2, kind: input, shape index: {}]   ;;  %s1959_s3 = inlined_call_operand.hbm [shape: bf16[1024,256], index: 3, kind: input, shape index: {}]   ;;  %s1960_s4 = inlined_call_operand.vmem [shape: f32[1,256], index: 4, kind: input, shape index: {}]   ;;  %s1961_s5 = inlined_call_operand.vmem [shape: f32[16,256], index: 5, kind: output, shape index: {}]  }
   0x1   :  { %11 = vsyncpa [#allocation5], 0  ;;  %s1831_s18 = smov [#allocation2]   ;;  %s1783_s22 = scalar_lea.hbm %s1957_s1, 2048 }
   0x2   :  { %s19_s19 = sshll.u32 %s1831_s18, 4  ;;  %p1784_p0 = scmp.ne.s32.totalorder %s1957_s1, %s1783_s22  ;;  %s20_s19 = int_to_ptr.vmem [resolvable:$true] %s19_s19 }
   0x3   :  { %p1787_p1 = scmp.lt.u32.totalorder %s1783_s22, %s1957_s1 }
   0x5   :  { %p1789_p2 = pnand %p1787_p1, %p1784_p0 }
   0x7   :  { %1792 = shalt.err (!%p1789_p2)
}
   0x8   :  { %s1793_s27 = scalar_lea.vmem %s20_s19, 2048  ;;  %p1798_p4 = scmp.lt.s32.totalorder %s20_s19, %s20_s19 }
   0x9   :  { %p1794_p3 = scmp.ne.s32.totalorder %s20_s19, %s1793_s27  ;;  %p1799_p5 = scmp.lt.s32.totalorder %s1793_s27, %s1793_s27 }
   0xb   :  { %p1800_p6 = por %p1799_p5, %p1798_p4 }
   0xd   :  { %p1801_p7 = pnand %p1800_p6, %p1794_p3 }
   0xf   :  { %1804 = shalt.err (!%p1801_p7)
}
  0x10   :  { %s1832_s28 = smov 512   ;;  %s1833_s29 = smov 32  }
  0x11   :  { %25 = dma.hbm_to_vmem [thread:$0]  %s1957_s1, 2048, %s20_s19, [#allocation3], %s1832_s28, %s1832_s28, %s1833_s29  }
  0x12   :  { %s1834_s7 = smov [#allocation4]   ;;  %s1805_s11 = scalar_lea.hbm %s1959_s3, 16384 }
  0x13   :  { %s33_s8 = sshll.u32 %s1834_s7, 4  ;;  %p1806_p8 = scmp.ne.s32.totalorder %s1959_s3, %s1805_s11  ;;  %s34_s8 = int_to_ptr.vmem [resolvable:$true] %s33_s8 }
  0x14   :  { %p1809_p9 = scmp.lt.u32.totalorder %s1805_s11, %s1959_s3 }
  0x16   :  { %p1811_p10 = pnand %p1809_p9, %p1806_p8 }
  0x18   :  { %1814 = shalt.err (!%p1811_p10)
}
  0x19   :  { %s1815_s16 = scalar_lea.vmem %s34_s8, 16384  ;;  %p1820_p12 = scmp.lt.s32.totalorder %s34_s8, %s34_s8 }
  0x1a   :  { %p1816_p11 = scmp.ne.s32.totalorder %s34_s8, %s1815_s16  ;;  %p1821_p13 = scmp.lt.s32.totalorder %s1815_s16, %s1815_s16 }
  0x1c   :  { %p1822_p0 = por %p1821_p13, %p1820_p12 }
  0x1e   :  { %p1823_p1 = pnand %p1822_p0, %p1816_p11 }
  0x20   :  { %1826 = shalt.err (!%p1823_p1)
}
  0x21   :  { %s1835_s1 = smov 128   ;;  %s1836_s17 = smov 8  }
  0x22   :  { %39 = dma.hbm_to_vmem [thread:$0]  %s1959_s3, 16384, %s34_s8, [#allocation5], %s1835_s1, %s1835_s1, %s1836_s17  }
  0x23   :  { %1827 = dma.done.wait [#allocation3], 2048  }
  0x24   :  { %1828 = vsyncadd [#allocation3], 4294965248 }
  0x25   :  { %1829 = dma.done.wait [#allocation5], 16384  }
  0x26   :  { %1830 = vsyncadd [#allocation5], 4294950912  ;;  %v1837_v0 = vmov 0   ;;  %v52_v1 = vld [vmem:[#allocation2] sm:$0xff]  ;;  %v54_v8 = vld [vmem:[#allocation2 + $0x10] sm:$0xff]  ;;  %vm190_vm0 = vcmask 261120  }
  0x27   :  { %226 = vmatprep.mubr.bf16.mxu0 %v1837_v0  ;;  %269 = vmatprep.mubr.bf16.mxu1 %v1837_v0  ;;  %v56_v2 = vld [vmem:[#allocation2 + $0x20] sm:$0xff]  ;;  %v58_v9 = vld [vmem:[#allocation2 + $0x30] sm:$0xff]  ;;  %v53_v11 = vld [vmem:[#allocation2 + $0x8] sm:$0xff] }
  0x28   :  { %v60_v3 = vld [vmem:[#allocation2 + $0x40] sm:$0xff]  ;;  %v1405_v4 = vcombine.high %v52_v1, %v56_v2  ;;  %v1404_v5 = vcombine.low %v52_v1, %v56_v2  ;;  %v57_v12 = vld [vmem:[#allocation2 + $0x28] sm:$0xff]  ;;  %v1409_v19 = vcombine.high %v54_v8, %v58_v9  ;;  %v62_v20 = vld [vmem:[#allocation2 + $0x50] sm:$0xff]  ;;  %v1408_v27 = vcombine.low %v54_v8, %v58_v9 }
  0x29   :  { %v64_v6 = vld [vmem:[#allocation2 + $0x60] sm:$0xff]  ;;  %v50_v14 = vld [vmem:[%s1956_s0 + $0x8] sm:$0xff]  ;;  %v1407_v15 = vcombine.high %v53_v11, %v57_v12  ;;  %v1406_v16 = vcombine.low %v53_v11, %v57_v12  ;;  %v66_v21 = vld [vmem:[#allocation2 + $0x70] sm:$0xff] }
  0x2a   :  { %v1413_v7 = vcombine.high %v60_v3, %v64_v6  ;;  %194 = vmatprep.subr.bf16.mxu0 %v1405_v4  ;;  %v49_v10 = vld [vmem:[%s1956_s0] sm:$0xff]  ;;  %v1412_v13 = vcombine.low %v60_v3, %v64_v6  ;;  %v61_v17 = vld [vmem:[#allocation2 + $0x48] sm:$0xff]  ;;  %v55_v23 = vld [vmem:[#allocation2 + $0x18] sm:$0xff]  ;;  %v1417_v28 = vcombine.high %v62_v20, %v66_v21  ;;  %v1416_v33 = vcombine.low %v62_v20, %v66_v21 }
  0x2b   :  { %195 = vmatpush1.bf16.msra.mxu0 %v1404_v5  ;;  %v65_v18 = vld [vmem:[#allocation2 + $0x68] sm:$0xff]  ;;  %237 = vmatprep.subr.bf16.mxu1 %v1407_v15  ;;  %v59_v24 = vld [vmem:[#allocation2 + $0x38] sm:$0xff]  ;;  %v51_v25 = vpack.c.bf16 %v50_v14, %v49_v10 }
  0x2c   :  { %196 = vmatprep.subr.bf16.mxu0 %v1413_v7  ;;  %v1415_v22 = vcombine.high %v61_v17, %v65_v18  ;;  %238 = vmatpush1.bf16.msra.mxu1 %v1406_v16  ;;  %v1414_v26 = vcombine.low %v61_v17, %v65_v18  ;;  %v1411_v29 = vcombine.high %v55_v23, %v59_v24  ;;  %v63_v30 = vld [vmem:[#allocation2 + $0x58] sm:$0xff]  ;;  %v1586_v35 = vld [vmem:[#allocation4 + $0x204] ss:$8 sps:$4 sm:$0xff]   ;;  %v1584_v38 = vld [vmem:[#allocation4 + $0x200] ss:$8 sps:$4 sm:$0xff]  }
  0x2d   :  { %v67_v31 = vld [vmem:[#allocation2 + $0x78] sm:$0xff]  ;;  %v1410_v32 = vcombine.low %v55_v23, %v59_v24  ;;  %v1577_v37 = vld [vmem:[#allocation4 + $0x4] ss:$8 sps:$4 sm:$0xff]   ;;  %v1575_v40 = vld [vmem:[#allocation4] ss:$8 sps:$4 sm:$0xff]  }
  0x2e   :  { %239 = vmatprep.subr.bf16.mxu1 %v1415_v22  ;;  %v1419_v34 = vcombine.high %v63_v30, %v67_v31  ;;  %v1418_v36 = vcombine.low %v63_v30, %v67_v31  ;;  %v1592_v39 = vld [vmem:[#allocation4 + $0x214] ss:$8 sps:$4 sm:$0xff]   ;;  %v1590_v42 = vld [vmem:[#allocation4 + $0x210] ss:$8 sps:$4 sm:$0xff]   ;;  %v1598_v43 = vld [vmem:[#allocation4 + $0x224] ss:$8 sps:$4 sm:$0xff]  }
  0x2f   :  { %197 = vmatpush1.bf16.msra.mxu0 %v1412_v13  ;;  %v1580_v41 = vld [vmem:[#allocation4 + $0x14] ss:$8 sps:$4 sm:$0xff]   ;;  %v1578_v44 = vld [vmem:[#allocation4 + $0x10] ss:$8 sps:$4 sm:$0xff]   ;;  %v1583_v45 = vld [vmem:[#allocation4 + $0x24] ss:$8 sps:$4 sm:$0xff]  }
  0x30   :  { %280 = vmatprep.subr.bf16.mxu0 %v1409_v19  ;;  %240 = vmatpush1.bf16.msra.mxu1 %v1414_v26  ;;  %v1596_v46 = vld [vmem:[#allocation4 + $0x220] ss:$8 sps:$4 sm:$0xff]   ;;  %v1604_v47 = vld [vmem:[#allocation4 + $0x234] ss:$8 sps:$4 sm:$0xff]   ;;  %v1602_v50 = vld [vmem:[#allocation4 + $0x230] ss:$8 sps:$4 sm:$0xff]  }
  0x31   :  { %323 = vmatprep.subr.bf16.mxu1 %v1411_v29  ;;  %v1581_v48 = vld [vmem:[#allocation4 + $0x20] ss:$8 sps:$4 sm:$0xff]   ;;  %v1589_v49 = vld [vmem:[#allocation4 + $0x34] ss:$8 sps:$4 sm:$0xff]   ;;  %v1610_v51 = vld [vmem:[#allocation4 + $0x244] ss:$8 sps:$4 sm:$0xff]  }
  0x32   :  { %1420 = vmatmul.mubr.msk.bf16.vlgmr.msra.gmra.mrb[0].mxu0 %vm190_vm0, %v51_v25  ;;  %v1587_v52 = vld [vmem:[#allocation4 + $0x30] ss:$8 sps:$4 sm:$0xff]   ;;  %v1595_v53 = vld [vmem:[#allocation4 + $0x44] ss:$8 sps:$4 sm:$0xff]   ;;  %v1608_v54 = vld [vmem:[#allocation4 + $0x240] ss:$8 sps:$4 sm:$0xff]  }
  0x33   :  { %281 = vmatpush1.bf16.msra.mxu0 %v1408_v27  ;;  %312 = vmatprep.mubr.bf16.mxu0 %v1837_v0  ;;  %v1616_v55 = vld [vmem:[#allocation4 + $0x254] ss:$8 sps:$4 sm:$0xff]   ;;  %v1593_v56 = vld [vmem:[#allocation4 + $0x40] ss:$8 sps:$4 sm:$0xff]   ;;  %v1614_v58 = vld [vmem:[#allocation4 + $0x250] ss:$8 sps:$4 sm:$0xff]  }
  0x34   :  { %282 = vmatprep.subr.bf16.mxu0 %v1417_v28  ;;  %1421 = vmatmul.mubr.msk.bf16.vlgmr.msra.gmra.mrb[0].mxu1 %vm190_vm0, %v51_v25  ;;  %v1601_v57 = vld [vmem:[#allocation4 + $0x54] ss:$8 sps:$4 sm:$0xff]   ;;  %v1599_v59 = vld [vmem:[#allocation4 + $0x50] ss:$8 sps:$4 sm:$0xff]   ;;  %v1622_v60 = vld [vmem:[#allocation4 + $0x264] ss:$8 sps:$4 sm:$0xff]  }
  0x35   :  { %324 = vmatpush1.bf16.msra.mxu1 %v1410_v32  ;;  %355 = vmatprep.mubr.bf16.mxu1 %v1837_v0  ;;  %v1607_v61 = vld [vmem:[#allocation4 + $0x64] ss:$8 sps:$4 sm:$0xff]   ;;  %v1620_v62 = vld [vmem:[#allocation4 + $0x260] ss:$8 sps:$4 sm:$0xff]   ;;  %v1628_v63 = vld [vmem:[#allocation4 + $0x274] ss:$8 sps:$4 sm:$0xff]  }
  0x36   :  { %325 = vmatprep.subr.bf16.mxu1 %v1419_v34  ;;  %v1605_v0 = vld [vmem:[#allocation4 + $0x60] ss:$8 sps:$4 sm:$0xff]   ;;  %v1613_v1 = vld [vmem:[#allocation4 + $0x74] ss:$8 sps:$4 sm:$0xff]   ;;  %v1626_v2 = vld [vmem:[#allocation4 + $0x270] ss:$8 sps:$4 sm:$0xff]  }
  0x37   :  { %283 = vmatpush1.bf16.msra.mxu0 %v1416_v33  ;;  %v1634_v3 = vld [vmem:[#allocation4 + $0x284] ss:$8 sps:$4 sm:$0xff]   ;;  %v1611_v4 = vld [vmem:[#allocation4 + $0x70] ss:$8 sps:$4 sm:$0xff]   ;;  %v1632_v6 = vld [vmem:[#allocation4 + $0x280] ss:$8 sps:$4 sm:$0xff]  }
  0x38   :  { %1272 = vmatprep.subr.bf16.mxu0 %v1586_v35  ;;  %v1619_v5 = vld [vmem:[#allocation4 + $0x84] ss:$8 sps:$4 sm:$0xff]   ;;  %v1640_v7 = vld [vmem:[#allocation4 + $0x294] ss:$8 sps:$4 sm:$0xff]   ;;  %v1617_v8 = vld [vmem:[#allocation4 + $0x80] ss:$8 sps:$4 sm:$0xff]  }
  0x39   :  { %326 = vmatpush1.bf16.msra.mxu1 %v1418_v36  ;;  %v1625_v9 = vld [vmem:[#allocation4 + $0x94] ss:$8 sps:$4 sm:$0xff]   ;;  %v1638_v10 = vld [vmem:[#allocation4 + $0x290] ss:$8 sps:$4 sm:$0xff]   ;;  %v1646_v11 = vld [vmem:[#allocation4 + $0x2a4] ss:$8 sps:$4 sm:$0xff]  }
  0x3a   :  { %1422 = vmatmul.mubr.msk.bf16.vlgmr.msra.gmra.mrb[4].mxu0 %vm190_vm0, %v51_v25  ;;  %1186 = vmatprep.subr.bf16.mxu1 %v1577_v37  ;;  %v1623_v12 = vld [vmem:[#allocation4 + $0x90] ss:$8 sps:$4 sm:$0xff]   ;;  %v1631_v13 = vld [vmem:[#allocation4 + $0xa4] ss:$8 sps:$4 sm:$0xff]   ;;  %v1644_v14 = vld [vmem:[#allocation4 + $0x2a0] ss:$8 sps:$4 sm:$0xff]  }
  0x3b   :  { %1273 = vmatpush1.bf16.msra.mxu0 %v1584_v38  ;;  %v1629_v15 = vld [vmem:[#allocation4 + $0xa0] ss:$8 sps:$4 sm:$0xff]   ;;  %v1637_v16 = vld [vmem:[#allocation4 + $0xb4] ss:$8 sps:$4 sm:$0xff]   ;;  %v1635_v17 = vld [vmem:[#allocation4 + $0xb0] ss:$8 sps:$4 sm:$0xff]   ;;  %v70_v38 = vlaneseq }
  0x3c   :  { %1274 = vmatprep.subr.bf16.mxu0 %v1592_v39  ;;  %1423 = vmatmul.mubr.msk.bf16.vlgmr.msra.gmra.mrb[4].mxu1 %vm190_vm0, %v51_v25  ;;  %v1643_v18 = vld [vmem:[#allocation4 + $0xc4] ss:$8 sps:$4 sm:$0xff]   ;;  %v1641_v19 = vld [vmem:[#allocation4 + $0xc0] ss:$8 sps:$4 sm:$0xff]   ;;  %v1649_v20 = vld [vmem:[#allocation4 + $0xd4] ss:$8 sps:$4 sm:$0xff]  }
  0x3d   :  { %1187 = vmatpush1.bf16.msra.mxu1 %v1575_v40  ;;  %v1652_v21 = vld [vmem:[#allocation4 + $0x2b4] ss:$8 sps:$4 sm:$0xff]   ;;  %v1647_v22 = vld [vmem:[#allocation4 + $0xd0] ss:$8 sps:$4 sm:$0xff]   ;;  %v1655_v24 = vld [vmem:[#allocation4 + $0xe4] ss:$8 sps:$4 sm:$0xff]  }
  0x3e   :  { %1188 = vmatprep.subr.bf16.mxu1 %v1580_v41  ;;  %v1650_v23 = vld [vmem:[#allocation4 + $0x2b0] ss:$8 sps:$4 sm:$0xff]   ;;  %v1658_v25 = vld [vmem:[#allocation4 + $0x2c4] ss:$8 sps:$4 sm:$0xff]   ;;  %v1653_v26 = vld [vmem:[#allocation4 + $0xe0] ss:$8 sps:$4 sm:$0xff]  }
  0x3f   :  { %1275 = vmatpush1.bf16.msra.mxu0 %v1590_v42  ;;  %v1656_v27 = vld [vmem:[#allocation4 + $0x2c0] ss:$8 sps:$4 sm:$0xff]   ;;  %v1661_v28 = vld [vmem:[#allocation4 + $0xf4] ss:$8 sps:$4 sm:$0xff]   ;;  %v1659_v30 = vld [vmem:[#allocation4 + $0xf0] ss:$8 sps:$4 sm:$0xff]  }
  0x40   :  { %1276 = vmatprep.subr.bf16.mxu0 %v1598_v43  ;;  %v1664_v29 = vld [vmem:[#allocation4 + $0x2d4] ss:$8 sps:$4 sm:$0xff]   ;;  %v1662_v31 = vld [vmem:[#allocation4 + $0x2d0] ss:$8 sps:$4 sm:$0xff]   ;;  %v1667_v32 = vld [vmem:[#allocation4 + $0x104] ss:$8 sps:$4 sm:$0xff]  }
  0x41   :  { %1189 = vmatpush1.bf16.msra.mxu1 %v1578_v44  ;;  %v1670_v33 = vld [vmem:[#allocation4 + $0x2e4] ss:$8 sps:$4 sm:$0xff]   ;;  %v1668_v34 = vld [vmem:[#allocation4 + $0x2e0] ss:$8 sps:$4 sm:$0xff]   ;;  %v1676_v35 = vld [vmem:[#allocation4 + $0x2f4] ss:$8 sps:$4 sm:$0xff]  }
  0x42   :  { %1190 = vmatprep.subr.bf16.mxu1 %v1583_v45  ;;  %v1674_v36 = vld [vmem:[#allocation4 + $0x2f0] ss:$8 sps:$4 sm:$0xff]   ;;  %v1682_v37 = vld [vmem:[#allocation4 + $0x304] ss:$8 sps:$4 sm:$0xff]   ;;  %v1902_v39 = vshrl.u32 %v70_v38, 7 }
  0x43   :  { %1277 = vmatpush1.bf16.msra.mxu0 %v1596_v46  ;;  %v68_v41 = vld [vmem:[%s1958_s2] sm:$0xff] }
  0x44   :  { %1278 = vmatprep.subr.bf16.mxu0 %v1604_v47  ;;  %v72_v40 = vsub.s32 0, %v1902_v39  ;;  %v76_v42 = vsub.s32 1, %v1902_v39  ;;  %v80_v43 = vsub.s32 2, %v1902_v39  ;;  %v84_v45 = vsub.s32 3, %v1902_v39 }
  0x45   :  { %1191 = vmatpush1.bf16.msra.mxu1 %v1581_v48  ;;  %v88_v48 = vsub.s32 4, %v1902_v39 }
  0x46   :  { %1192 = vmatprep.subr.bf16.mxu1 %v1589_v49  ;;  %v73_v44 = vrot.slane %v68_v41, %v72_v40  ;;  %v77_v46 = vrot.slane %v68_v41, %v76_v42  ;;  %v81_v49 = vrot.slane %v68_v41, %v80_v43 }
  0x47   :  { %1279 = vmatpush1.bf16.msra.mxu0 %v1602_v50 }
  0x48   :  { %1280 = vmatprep.subr.bf16.mxu0 %v1610_v51 }
  0x49   :  { %1193 = vmatpush1.bf16.msra.mxu1 %v1587_v52  ;;  %v92_v52 = vsub.s32 5, %v1902_v39 }
  0x4a   :  { %1194 = vmatprep.subr.bf16.mxu1 %v1595_v53  ;;  %v85_v53 = vrot.slane %v68_v41, %v84_v45 }
  0x4b   :  { %1281 = vmatpush1.bf16.msra.mxu0 %v1608_v54  ;;  %v96_v54 = vsub.s32 6, %v1902_v39 }
  0x4c   :  { %1282 = vmatprep.subr.bf16.mxu0 %v1616_v55 }
  0x4d   :  { %1195 = vmatpush1.bf16.msra.mxu1 %v1593_v56 }
  0x4e   :  { %1196 = vmatprep.subr.bf16.mxu1 %v1601_v57  ;;  %v100_v57 = vsub.s32 7, %v1902_v39 }
  0x4f   :  { %1283 = vmatpush1.bf16.msra.mxu0 %v1614_v58 }
  0x50   :  { %1284 = vmatprep.subr.bf16.mxu0 %v1622_v60 }
  0x51   :  { %1197 = vmatpush1.bf16.msra.mxu1 %v1599_v59 }
  0x52   :  { %1198 = vmatprep.subr.bf16.mxu1 %v1607_v61 }
  0x53   :  { %1285 = vmatpush1.bf16.msra.mxu0 %v1620_v62 }
  0x54   :  { %1286 = vmatprep.subr.bf16.mxu0 %v1628_v63 }
  0x55   :  { %1199 = vmatpush1.bf16.msra.mxu1 %v1605_v0  ;;  %v89_v0 = vrot.slane %v68_v41, %v88_v48 }
  0x56   :  { %1200 = vmatprep.subr.bf16.mxu1 %v1613_v1 }
  0x57   :  { %1287 = vmatpush1.bf16.msra.mxu0 %v1626_v2 }
  0x58   :  { %1288 = vmatprep.subr.bf16.mxu0 %v1634_v3 }
  0x59   :  { %1201 = vmatpush1.bf16.msra.mxu1 %v1611_v4  ;;  %v93_v4 = vrot.slane %v68_v41, %v92_v52 }
  0x5a   :  { %1202 = vmatprep.subr.bf16.mxu1 %v1619_v5 }
  0x5b   :  { %1289 = vmatpush1.bf16.msra.mxu0 %v1632_v6 }
  0x5c   :  { %1290 = vmatprep.subr.bf16.mxu0 %v1640_v7  ;;  %v97_v7 = vrot.slane %v68_v41, %v96_v54 }
  0x5d   :  { %1203 = vmatpush1.bf16.msra.mxu1 %v1617_v8 }
  0x5e   :  { %1204 = vmatprep.subr.bf16.mxu1 %v1625_v9 }
  0x5f   :  { %1291 = vmatpush1.bf16.msra.mxu0 %v1638_v10 }
  0x60   :  { %1292 = vmatprep.subr.bf16.mxu0 %v1646_v11 }
  0x61   :  { %1205 = vmatpush1.bf16.msra.mxu1 %v1623_v12  ;;  %v101_v12 = vrot.slane %v68_v41, %v100_v57  ;;  %v1679_v57 = vld [vmem:[#allocation4 + $0x124] ss:$8 sps:$4 sm:$0xff]  }
  0x62   :  { %1206 = vmatprep.subr.bf16.mxu1 %v1631_v13 }
  0x63   :  { %1293 = vmatpush1.bf16.msra.mxu0 %v1644_v14 }
  0x64   :  { %1294 = vmatprep.subr.bf16.mxu0 %v1652_v21 }
  0x65   :  { %1207 = vmatpush1.bf16.msra.mxu1 %v1629_v15 }
  0x66   :  { %1208 = vmatprep.subr.bf16.mxu1 %v1637_v16 }
  0x67   :  { %1295 = vmatpush1.bf16.msra.mxu0 %v1650_v23 }
  0x68   :  { %1296 = vmatprep.subr.bf16.mxu0 %v1658_v25 }
  0x69   :  { %1209 = vmatpush1.bf16.msra.mxu1 %v1635_v17 }
  0x6a   :  { %1210 = vmatprep.subr.bf16.mxu1 %v1643_v18 }
  0x6b   :  { %1297 = vmatpush1.bf16.msra.mxu0 %v1656_v27 }
  0x6c   :  { %1298 = vmatprep.subr.bf16.mxu0 %v1664_v29 }
  0x6d   :  { %1211 = vmatpush1.bf16.msra.mxu1 %v1641_v19 }
  0x6e   :  { %1212 = vmatprep.subr.bf16.mxu1 %v1649_v20 }
  0x6f   :  { %1299 = vmatpush1.bf16.msra.mxu0 %v1662_v31 }
  0x70   :  { %1300 = vmatprep.subr.bf16.mxu0 %v1670_v33 }
  0x71   :  { %1213 = vmatpush1.bf16.msra.mxu1 %v1647_v22 }
  0x72   :  { %1214 = vmatprep.subr.bf16.mxu1 %v1655_v24 }
  0x73   :  { %1301 = vmatpush1.bf16.msra.mxu0 %v1668_v34 }
  0x74   :  { %1302 = vmatprep.subr.bf16.mxu0 %v1676_v35  ;;  %v1673_v35 = vld [vmem:[#allocation4 + $0x114] ss:$8 sps:$4 sm:$0xff]  }
  0x75   :  { %1215 = vmatpush1.bf16.msra.mxu1 %v1653_v26 }
  0x76   :  { %1216 = vmatprep.subr.bf16.mxu1 %v1661_v28 }
  0x77   :  { %1303 = vmatpush1.bf16.msra.mxu0 %v1674_v36 }
  0x78   :  { %1315 = vmatprep.subr.bf16.mxu0 %v1682_v37 }
  0x79   :  { %1217 = vmatpush1.bf16.msra.mxu1 %v1659_v30  ;;  %v1665_v30 = vld [vmem:[#allocation4 + $0x100] ss:$8 sps:$4 sm:$0xff]  }
  0x7a   :  { %1229 = vmatprep.subr.bf16.mxu1 %v1667_v32 }
 0x105   :  { %v228_v47 = vpop.f32.mrb[0].mxu0 }
 0x106   :  { %v229_v50 = vadd.f32 %v228_v47, %v73_v44  ;;  %v230_v51 = vpop.f32.mrb[1].mxu0 }
 0x107   :  { %v231_v55 = vadd.f32 %v230_v51, %v77_v46  ;;  %v232_v56 = vpop.f32.mrb[2].mxu0  ;;  %v271_v61 = vpop.f32.mrb[0].mxu1  ;;  %v1671_v51 = vld [vmem:[#allocation4 + $0x110] ss:$8 sps:$4 sm:$0xff]  }
 0x108   :  { %v366_v58 = vmax.f32 %v229_v50, 0.0  ;;  %v233_v59 = vadd.f32 %v232_v56, %v73_v44  ;;  %v234_v60 = vpop.f32.mrb[3].mxu0  ;;  %v272_v1 = vadd.f32 %v271_v61, %v81_v49  ;;  %v273_v2 = vpop.f32.mrb[1].mxu1 }
 0x109   :  { %v367_v62 = vmax.f32 %v231_v55, 0.0  ;;  %v235_v63 = vadd.f32 %v234_v60, %v77_v46  ;;  %v274_v5 = vadd.f32 %v273_v2, %v85_v53  ;;  %v275_v6 = vpop.f32.mrb[2].mxu1 }
 0x10a   :  { %v374_v3 = vmax.f32 %v233_v59, 0.0  ;;  %v368_v9 = vmax.f32 %v272_v1, 0.0  ;;  %v276_v10 = vadd.f32 %v275_v6, %v81_v49  ;;  %v277_v11 = vpop.f32.mrb[3].mxu1  ;;  %v382_v13 = vmin.f32 %v366_v58, 6.0 }
 0x10b   :  { %v375_v8 = vmax.f32 %v235_v63, 0.0  ;;  %v369_v15 = vmax.f32 %v274_v5, 0.0  ;;  %v278_v16 = vadd.f32 %v277_v11, %v85_v53  ;;  %v383_v17 = vmin.f32 %v367_v62, 6.0  ;;  %v1680_v5 = vld [vmem:[#allocation4 + $0x300] ss:$8 sps:$4 sm:$0xff]  }
 0x10c   :  { %v390_v14 = vmin.f32 %v374_v3, 6.0  ;;  %v1919_v20 = vmin.f32 %v368_v9, 6.0  ;;  %v376_v21 = vmax.f32 %v276_v10, 0.0 }
 0x10d   :  { %v391_v18 = vmin.f32 %v375_v8, 6.0  ;;  %v314_v19 = vpop.f32.mrb[4].mxu0  ;;  %v385_v25 = vmin.f32 %v369_v15, 6.0  ;;  %v377_v26 = vmax.f32 %v278_v16, 0.0  ;;  %v1688_v8 = vld [vmem:[#allocation4 + $0x314] ss:$8 sps:$4 sm:$0xff]  }
 0x10e   :  { %v398_v22 = vpack.c.bf16 %v390_v14, %v382_v13  ;;  %v315_v23 = vadd.f32 %v314_v19, %v89_v0  ;;  %v316_v24 = vpop.f32.mrb[5].mxu0  ;;  %v1921_v31 = vmin.f32 %v376_v21, 6.0  ;;  %v1686_v13 = vld [vmem:[#allocation4 + $0x310] ss:$8 sps:$4 sm:$0xff]   ;;  %v1691_v14 = vld [vmem:[#allocation4 + $0x144] ss:$8 sps:$4 sm:$0xff]  }
 0x10f   :  { %v399_v27 = vpack.c.bf16 %v391_v18, %v383_v17  ;;  %v317_v28 = vadd.f32 %v316_v24, %v93_v4  ;;  %v318_v29 = vpop.f32.mrb[6].mxu0  ;;  %v393_v36 = vmin.f32 %v377_v26, 6.0  ;;  %v357_v37 = vpop.f32.mrb[4].mxu1  ;;  %v1694_v15 = vld [vmem:[#allocation4 + $0x324] ss:$8 sps:$4 sm:$0xff]  }
 0x110   :  { %v370_v32 = vmax.f32 %v315_v23, 0.0  ;;  %v319_v33 = vadd.f32 %v318_v29, %v89_v0  ;;  %v320_v34 = vpop.f32.mrb[7].mxu0  ;;  %v400_v43 = vpack.c.bf16 %v1921_v31, %v1919_v20  ;;  %v358_v44 = vadd.f32 %v357_v37, %v97_v7  ;;  %v359_v45 = vpop.f32.mrb[5].mxu1  ;;  %v1689_v16 = vld [vmem:[#allocation4 + $0x140] ss:$8 sps:$4 sm:$0xff]  }
 0x111   :  { %v371_v38 = vmax.f32 %v317_v28, 0.0  ;;  %v321_v41 = vadd.f32 %v320_v34, %v93_v4  ;;  %1218 = vmatprep.mubr.bf16.mxu1 %v399_v27  ;;  %v401_v47 = vpack.c.bf16 %v393_v36, %v385_v25  ;;  %v360_v48 = vadd.f32 %v359_v45, %v101_v12  ;;  %v361_v49 = vpop.f32.mrb[6].mxu1  ;;  %v1677_v4 = vld [vmem:[#allocation4 + $0x120] ss:$8 sps:$4 sm:$0xff]   ;;  %v1697_v18 = vld [vmem:[#allocation4 + $0x154] ss:$8 sps:$4 sm:$0xff]  }
 0x112   :  { %v378_v46 = vmax.f32 %v319_v33, 0.0  ;;  %1219 = vmatmul.mubr.bf16.vlgmr.msra.gmra.mrb[8].mxu1 %v398_v22  ;;  %v372_v52 = vmax.f32 %v358_v44, 0.0  ;;  %v362_v53 = vadd.f32 %v361_v49, %v97_v7  ;;  %v363_v54 = vpop.f32.mrb[7].mxu1  ;;  %v386_v55 = vmin.f32 %v370_v32, 6.0  ;;  %v1685_v7 = vld [vmem:[#allocation4 + $0x134] ss:$8 sps:$4 sm:$0xff]  }
 0x113   :  { %v379_v50 = vmax.f32 %v321_v41, 0.0  ;;  %1230 = vmatpush1.bf16.msra.mxu1 %v1665_v30  ;;  %v373_v58 = vmax.f32 %v360_v48, 0.0  ;;  %v364_v59 = vadd.f32 %v363_v54, %v101_v12  ;;  %1261 = vmatprep.mubr.bf16.mxu1 %v401_v47  ;;  %v387_v60 = vmin.f32 %v371_v38, 6.0  ;;  %v1683_v12 = vld [vmem:[#allocation4 + $0x130] ss:$8 sps:$4 sm:$0xff]  }
 0x114   :  { %v394_v56 = vmin.f32 %v378_v46, 6.0  ;;  %1231 = vmatprep.subr.bf16.mxu1 %v1673_v35  ;;  %v1925_v62 = vmin.f32 %v372_v52, 6.0  ;;  %v380_v63 = vmax.f32 %v362_v53, 0.0  ;;  %v1692_v17 = vld [vmem:[#allocation4 + $0x320] ss:$8 sps:$4 sm:$0xff]  }
 0x115   :  { %v395_v61 = vmin.f32 %v379_v50, 6.0  ;;  %v389_v1 = vmin.f32 %v373_v58, 6.0  ;;  %v381_v2 = vmax.f32 %v364_v59, 0.0  ;;  %v1700_v19 = vld [vmem:[#allocation4 + $0x334] ss:$8 sps:$4 sm:$0xff]  }
 0x116   :  { %v402_v0 = vpack.c.bf16 %v394_v56, %v386_v55  ;;  %v1927_v6 = vmin.f32 %v380_v63, 6.0  ;;  %v1695_v21 = vld [vmem:[#allocation4 + $0x150] ss:$8 sps:$4 sm:$0xff]   ;;  %v1703_v23 = vld [vmem:[#allocation4 + $0x164] ss:$8 sps:$4 sm:$0xff]  }
 0x117   :  { %v403_v3 = vpack.c.bf16 %v395_v61, %v387_v60  ;;  %1232 = vmatpush1.bf16.msra.mxu1 %v1671_v51  ;;  %v397_v9 = vmin.f32 %v381_v2, 6.0  ;;  %v1698_v22 = vld [vmem:[#allocation4 + $0x330] ss:$8 sps:$4 sm:$0xff]   ;;  %v1706_v24 = vld [vmem:[#allocation4 + $0x344] ss:$8 sps:$4 sm:$0xff]  }
 0x118   :  { %1233 = vmatprep.subr.bf16.mxu1 %v1679_v57  ;;  %v404_v10 = vpack.c.bf16 %v1927_v6, %v1925_v62  ;;  %v1701_v25 = vld [vmem:[#allocation4 + $0x160] ss:$8 sps:$4 sm:$0xff]   ;;  %v1709_v27 = vld [vmem:[#allocation4 + $0x174] ss:$8 sps:$4 sm:$0xff]   ;;  %v1707_v29 = vld [vmem:[#allocation4 + $0x170] ss:$8 sps:$4 sm:$0xff]  }
 0x119   :  { %1304 = vmatprep.mubr.bf16.mxu0 %v403_v3  ;;  %v405_v11 = vpack.c.bf16 %v397_v9, %v389_v1  ;;  %v1704_v26 = vld [vmem:[#allocation4 + $0x340] ss:$8 sps:$4 sm:$0xff]   ;;  %v1712_v28 = vld [vmem:[#allocation4 + $0x354] ss:$8 sps:$4 sm:$0xff]   ;;  %v1710_v30 = vld [vmem:[#allocation4 + $0x350] ss:$8 sps:$4 sm:$0xff]  }
 0x11a   :  { %1305 = vmatmul.mubr.bf16.vlgmr.msra.gmra.mrb[8].mxu0 %v402_v0  ;;  %v1715_v32 = vld [vmem:[#allocation4 + $0x184] ss:$8 sps:$4 sm:$0xff]   ;;  %v1713_v34 = vld [vmem:[#allocation4 + $0x180] ss:$8 sps:$4 sm:$0xff]   ;;  %v1721_v36 = vld [vmem:[#allocation4 + $0x194] ss:$8 sps:$4 sm:$0xff]  }
 0x11b   :  { %1234 = vmatpush1.bf16.msra.mxu1 %v1677_v4  ;;  %1316 = vmatpush1.bf16.msra.mxu0 %v1680_v5  ;;  %v1718_v33 = vld [vmem:[#allocation4 + $0x364] ss:$8 sps:$4 sm:$0xff]   ;;  %v1716_v35 = vld [vmem:[#allocation4 + $0x360] ss:$8 sps:$4 sm:$0xff]   ;;  %v1724_v37 = vld [vmem:[#allocation4 + $0x374] ss:$8 sps:$4 sm:$0xff]  }
 0x11c   :  { %1235 = vmatprep.subr.bf16.mxu1 %v1685_v7  ;;  %1317 = vmatprep.subr.bf16.mxu0 %v1688_v8  ;;  %v1719_v38 = vld [vmem:[#allocation4 + $0x190] ss:$8 sps:$4 sm:$0xff]   ;;  %v1727_v44 = vld [vmem:[#allocation4 + $0x1a4] ss:$8 sps:$4 sm:$0xff]   ;;  %v1725_v46 = vld [vmem:[#allocation4 + $0x1a0] ss:$8 sps:$4 sm:$0xff]  }
 0x11d   :  { %1347 = vmatprep.mubr.bf16.mxu0 %v405_v11  ;;  %v1722_v41 = vld [vmem:[#allocation4 + $0x370] ss:$8 sps:$4 sm:$0xff]   ;;  %v1730_v45 = vld [vmem:[#allocation4 + $0x384] ss:$8 sps:$4 sm:$0xff]   ;;  %v1728_v47 = vld [vmem:[#allocation4 + $0x380] ss:$8 sps:$4 sm:$0xff]  }
 0x11e   :  { %v1733_v48 = vld [vmem:[#allocation4 + $0x1b4] ss:$8 sps:$4 sm:$0xff]   ;;  %v1731_v50 = vld [vmem:[#allocation4 + $0x1b0] ss:$8 sps:$4 sm:$0xff]   ;;  %v1739_v52 = vld [vmem:[#allocation4 + $0x1c4] ss:$8 sps:$4 sm:$0xff]  }
 0x11f   :  { %1236 = vmatpush1.bf16.msra.mxu1 %v1683_v12  ;;  %1318 = vmatpush1.bf16.msra.mxu0 %v1686_v13  ;;  %v1736_v49 = vld [vmem:[#allocation4 + $0x394] ss:$8 sps:$4 sm:$0xff]   ;;  %v1734_v51 = vld [vmem:[#allocation4 + $0x390] ss:$8 sps:$4 sm:$0xff]   ;;  %v1742_v53 = vld [vmem:[#allocation4 + $0x3a4] ss:$8 sps:$4 sm:$0xff]  }
 0x120   :  { %1237 = vmatprep.subr.bf16.mxu1 %v1691_v14  ;;  %1319 = vmatprep.subr.bf16.mxu0 %v1694_v15  ;;  %v1737_v54 = vld [vmem:[#allocation4 + $0x1c0] ss:$8 sps:$4 sm:$0xff]   ;;  %v1745_v56 = vld [vmem:[#allocation4 + $0x1d4] ss:$8 sps:$4 sm:$0xff]   ;;  %v1743_v58 = vld [vmem:[#allocation4 + $0x1d0] ss:$8 sps:$4 sm:$0xff]  }
 0x121   :  { %v1740_v55 = vld [vmem:[#allocation4 + $0x3a0] ss:$8 sps:$4 sm:$0xff]   ;;  %v1748_v57 = vld [vmem:[#allocation4 + $0x3b4] ss:$8 sps:$4 sm:$0xff]   ;;  %v1746_v59 = vld [vmem:[#allocation4 + $0x3b0] ss:$8 sps:$4 sm:$0xff]  }
 0x122   :  { %v1751_v60 = vld [vmem:[#allocation4 + $0x1e4] ss:$8 sps:$4 sm:$0xff]   ;;  %v1749_v63 = vld [vmem:[#allocation4 + $0x1e0] ss:$8 sps:$4 sm:$0xff]   ;;  %v1757_v1 = vld [vmem:[#allocation4 + $0x1f4] ss:$8 sps:$4 sm:$0xff]  }
 0x123   :  { %1238 = vmatpush1.bf16.msra.mxu1 %v1689_v16  ;;  %1320 = vmatpush1.bf16.msra.mxu0 %v1692_v17  ;;  %v1754_v61 = vld [vmem:[#allocation4 + $0x3c4] ss:$8 sps:$4 sm:$0xff]   ;;  %v1752_v0 = vld [vmem:[#allocation4 + $0x3c0] ss:$8 sps:$4 sm:$0xff]   ;;  %v1760_v2 = vld [vmem:[#allocation4 + $0x3d4] ss:$8 sps:$4 sm:$0xff]  }
 0x124   :  { %1239 = vmatprep.subr.bf16.mxu1 %v1697_v18  ;;  %1321 = vmatprep.subr.bf16.mxu0 %v1700_v19  ;;  %v1755_v3 = vld [vmem:[#allocation4 + $0x1f0] ss:$8 sps:$4 sm:$0xff]   ;;  %v1763_v5 = vld [vmem:[#allocation4 + $0x3e4] ss:$8 sps:$4 sm:$0xff]   ;;  %v1761_v7 = vld [vmem:[#allocation4 + $0x3e0] ss:$8 sps:$4 sm:$0xff]  }
 0x125   :  { %v1758_v4 = vld [vmem:[#allocation4 + $0x3d0] ss:$8 sps:$4 sm:$0xff]   ;;  %v1766_v8 = vld [vmem:[#allocation4 + $0x3f4] ss:$8 sps:$4 sm:$0xff]   ;;  %v534_v11 = vld [vmem:[%s1960_s4] sm:$0x3] }
 0x126   :  { %v1764_v9 = vld [vmem:[#allocation4 + $0x3f0] ss:$8 sps:$4 sm:$0xff]   ;;  %v539_v15 = vrot.slane %v534_v11, %v72_v40  ;;  %v543_v31 = vrot.slane %v534_v11, %v76_v42 }
 0x127   :  { %1240 = vmatpush1.bf16.msra.mxu1 %v1695_v21  ;;  %1322 = vmatpush1.bf16.msra.mxu0 %v1698_v22 }
 0x128   :  { %1241 = vmatprep.subr.bf16.mxu1 %v1703_v23  ;;  %1323 = vmatprep.subr.bf16.mxu0 %v1706_v24 }
 0x12b   :  { %1242 = vmatpush1.bf16.msra.mxu1 %v1701_v25  ;;  %1324 = vmatpush1.bf16.msra.mxu0 %v1704_v26 }
 0x12c   :  { %1243 = vmatprep.subr.bf16.mxu1 %v1709_v27  ;;  %1325 = vmatprep.subr.bf16.mxu0 %v1712_v28 }
 0x12f   :  { %1244 = vmatpush1.bf16.msra.mxu1 %v1707_v29  ;;  %1326 = vmatpush1.bf16.msra.mxu0 %v1710_v30 }
 0x130   :  { %1245 = vmatprep.subr.bf16.mxu1 %v1715_v32  ;;  %1327 = vmatprep.subr.bf16.mxu0 %v1718_v33 }
 0x133   :  { %1246 = vmatpush1.bf16.msra.mxu1 %v1713_v34  ;;  %1328 = vmatpush1.bf16.msra.mxu0 %v1716_v35 }
 0x134   :  { %1247 = vmatprep.subr.bf16.mxu1 %v1721_v36  ;;  %1329 = vmatprep.subr.bf16.mxu0 %v1724_v37 }
 0x137   :  { %1248 = vmatpush1.bf16.msra.mxu1 %v1719_v38  ;;  %1330 = vmatpush1.bf16.msra.mxu0 %v1722_v41 }
 0x138   :  { %1249 = vmatprep.subr.bf16.mxu1 %v1727_v44  ;;  %1331 = vmatprep.subr.bf16.mxu0 %v1730_v45 }
 0x13b   :  { %1250 = vmatpush1.bf16.msra.mxu1 %v1725_v46  ;;  %1332 = vmatpush1.bf16.msra.mxu0 %v1728_v47 }
 0x13c   :  { %1251 = vmatprep.subr.bf16.mxu1 %v1733_v48  ;;  %1333 = vmatprep.subr.bf16.mxu0 %v1736_v49 }
 0x13f   :  { %1252 = vmatpush1.bf16.msra.mxu1 %v1731_v50  ;;  %1334 = vmatpush1.bf16.msra.mxu0 %v1734_v51 }
 0x140   :  { %1253 = vmatprep.subr.bf16.mxu1 %v1739_v52  ;;  %1335 = vmatprep.subr.bf16.mxu0 %v1742_v53 }
 0x143   :  { %1254 = vmatpush1.bf16.msra.mxu1 %v1737_v54  ;;  %1336 = vmatpush1.bf16.msra.mxu0 %v1740_v55 }
 0x144   :  { %1255 = vmatprep.subr.bf16.mxu1 %v1745_v56  ;;  %1337 = vmatprep.subr.bf16.mxu0 %v1748_v57 }
 0x147   :  { %1256 = vmatpush1.bf16.msra.mxu1 %v1743_v58  ;;  %1338 = vmatpush1.bf16.msra.mxu0 %v1746_v59 }
 0x148   :  { %1257 = vmatprep.subr.bf16.mxu1 %v1751_v60  ;;  %1339 = vmatprep.subr.bf16.mxu0 %v1754_v61 }
 0x14b   :  { %1258 = vmatpush1.bf16.msra.mxu1 %v1749_v63  ;;  %1340 = vmatpush1.bf16.msra.mxu0 %v1752_v0 }
 0x14c   :  { %1259 = vmatprep.subr.bf16.mxu1 %v1757_v1  ;;  %1341 = vmatprep.subr.bf16.mxu0 %v1760_v2 }
 0x14f   :  { %1260 = vmatpush1.bf16.msra.mxu1 %v1755_v3  ;;  %1342 = vmatpush1.bf16.msra.mxu0 %v1758_v4 }
 0x150   :  { %1343 = vmatprep.subr.bf16.mxu0 %v1763_v5 }
 0x152   :  { %1262 = vmatmul.mubr.bf16.vlgmr.msra.gmra.mrb[8].mxu1 %v400_v43 }
 0x153   :  { %1344 = vmatpush1.bf16.msra.mxu0 %v1761_v7 }
 0x154   :  { %1345 = vmatprep.subr.bf16.mxu0 %v1766_v8 }
 0x157   :  { %1346 = vmatpush1.bf16.msra.mxu0 %v1764_v9 }
 0x15a   :  { %1348 = vmatmul.mubr.bf16.vlgmr.msra.gmra.mrb[8].mxu0 %v404_v10 }
 0x225   :  { %v1263_v12 = vpop.f32.mrb[8].mxu1 }
 0x226   :  { %v1265_v13 = vpop.f32.mrb[9].mxu1  ;;  %v1552_v43 = vadd.f32 %v1263_v12, %v539_v15 }
 0x227   :  { %v1267_v14 = vpop.f32.mrb[10].mxu1  ;;  %v1554_v16 = vadd.f32 %v1265_v13, %v543_v31 }
 0x228   :  { %v1269_v20 = vpop.f32.mrb[11].mxu1  ;;  %v1556_v18 = vadd.f32 %v1267_v14, %v539_v15 }
 0x229   :  { %v1558_v10 = vadd.f32 %v1269_v20, %v543_v31 }
 0x22d   :  { %v1349_v17 = vpop.f32.mrb[8].mxu0 }
 0x22e   :  { %v1553_v62 = vadd.f32 %v1552_v43, %v1349_v17  ;;  %v1351_v6 = vpop.f32.mrb[9].mxu0 }
 0x22f   :  { %v1555_v19 = vadd.f32 %v1554_v16, %v1351_v6  ;;  %v1353_v21 = vpop.f32.mrb[10].mxu0 }
 0x230   :  { %v1358_v22 = vand.u32 2147483647, %v1553_v62  ;;  %v1557_v23 = vadd.f32 %v1556_v18, %v1353_v21  ;;  %v1355_v24 = vpop.f32.mrb[11].mxu0  ;;  %vm1382_vm1 = vcmp.ge.f32.partialorder %v1553_v62, 0.0 }
 0x231   :  { %v1359_v25 = vand.u32 2147483647, %v1555_v19  ;;  %v1559_v26 = vadd.f32 %v1558_v10, %v1355_v24  ;;  %vm1383_vm2 = vcmp.ge.f32.partialorder %v1555_v19, 0.0 }
 0x232   :  { %v1362_v27 = vsub.f32 0.0, %v1358_v22  ;;  %v1360_v40 = vand.u32 2147483647, %v1557_v23  ;;  %vm1384_vm3 = vcmp.ge.f32.partialorder %v1557_v23, 0.0 }
 0x233   :  { %v1363_v28 = vsub.f32 0.0, %v1359_v25  ;;  %v1361_v29 = vand.u32 2147483647, %v1559_v26  ;;  %vm1385_vm4 = vcmp.ge.f32.partialorder %v1559_v26, 0.0 }
 0x234   :  { %v1366_v39 = vmul.f32 1.442695, %v1362_v27  ;;  %v1364_v42 = vsub.f32 0.0, %v1360_v40 }
 0x235   :  { %v1368_v30 = vmul.f32 1.442695, %v1363_v28  ;;  %v1365_v32 = vsub.f32 0.0, %v1361_v29 }
 0x236   :  { %1767 = vpow2.f32 %v1366_v39  ;;  %v1370_v33 = vmul.f32 1.442695, %v1364_v42 }
 0x237   :  { %1769 = vpow2.f32 %v1368_v30  ;;  %v1372_v34 = vmul.f32 1.442695, %v1365_v32 }
 0x238   :  { %1771 = vpow2.f32 %v1370_v33 }
 0x239   :  { %1773 = vpow2.f32 %v1372_v34 }
 0x240   :  { %v1768_v35 = vpop.eup %1767 }
 0x241   :  { %v1770_v36 = vpop.eup %1769  ;;  %v1374_v37 = vadd.f32 1.0, %v1768_v35 }
 0x242   :  { %v1772_v38 = vpop.eup %1771  ;;  %v1375_v41 = vadd.f32 1.0, %v1770_v36 }
 0x243   :  { %v1774_v44 = vpop.eup %1773  ;;  %1775 = vrcp.f32 %v1374_v37  ;;  %v1376_v45 = vadd.f32 1.0, %v1772_v38 }
 0x244   :  { %1777 = vrcp.f32 %v1375_v41  ;;  %v1377_v46 = vadd.f32 1.0, %v1774_v44 }
 0x245   :  { %1779 = vrcp.f32 %v1376_v45 }
 0x246   :  { %1781 = vrcp.f32 %v1377_v46 }
 0x24d   :  { %v1776_v47 = vpop.eup %1775 }
 0x24e   :  { %v1778_v48 = vpop.eup %1777  ;;  %v1386_v49 = vmul.f32 %v1776_v47, %v1768_v35 }
 0x24f   :  { %v1780_v50 = vpop.eup %1779  ;;  %v1387_v51 = vmul.f32 %v1778_v48, %v1770_v36 }
 0x250   :  { %v1782_v52 = vpop.eup %1781  ;;  %v1390_v53 = vsel %vm1382_vm1, %v1776_v47, %v1386_v49  ;;  %v1388_v54 = vmul.f32 %v1780_v50, %v1772_v38 }
 0x251   :  { %1394 = vst [vmem:[%s1961_s5] sm:$0xff] %v1390_v53  ;;  %v1391_v55 = vsel %vm1383_vm2, %v1778_v48, %v1387_v51  ;;  %v1389_v56 = vmul.f32 %v1782_v52, %v1774_v44 }
 0x252   :  { %1395 = vst [vmem:[%s1961_s5 + $0x8] sm:$0xff] %v1391_v55  ;;  %v1392_v57 = vsel %vm1384_vm3, %v1780_v50, %v1388_v54 }
 0x253   :  { %1396 = vst [vmem:[%s1961_s5 + $0x10] sm:$0xff] %v1392_v57  ;;  %v1393_v58 = vsel %vm1385_vm4, %v1782_v52, %v1389_v56 }
 0x254   :  { %1397 = vst [vmem:[%s1961_s5 + $0x18] sm:$0xff] %v1393_v58 }
 0x255   :  { %1402 = vsyncpa [#allocation3], 1 }
 0x256   :  { %1403 = vsyncpa [#allocation5], 1 }

</bundles_post_ra>
